<compile_context>
chip_gen: v7x
topology: tpu7x:2x2x1
jax: 0.10.0
libtpu: 0.0.40
codegen_flags: <defaults>
</compile_context>

<pallas_src>
import jax
import jax.numpy as jnp
import numpy as np
from jax.experimental import pallas as pl
from jax.experimental.pallas import tpu as pltpu


# ----------------------------- Pallas kernel ------------------------------ #
def _fused_mlp_kernel(x_ref, w1_ref, b1_ref, w2_ref, b2_ref, w3_ref, b3_ref,
                      o_ref):
    """y = ((x @ W1 + b1) @ W2 + b2) @ W3 + b3, all operands resident in VMEM.

    Weights are bf16; every matmul accumulates in f32 on the MXU.
    """
    h = jnp.dot(x_ref[...].astype(jnp.bfloat16), w1_ref[...],
                preferred_element_type=jnp.float32) + b1_ref[...]
    h = jnp.dot(h.astype(jnp.bfloat16), w2_ref[...],
                preferred_element_type=jnp.float32) + b2_ref[...]
    y = jnp.dot(h.astype(jnp.bfloat16), w3_ref[...],
                preferred_element_type=jnp.float32) + b3_ref[...]
    o_ref[...] = y.astype(o_ref.dtype)


def mlp_pallas(x, params):
    """Fused 3-layer MLP forward.

    x: (M, K0) f32.  params: [(W, b)] * 3 with W: (in, out) (bf16 or f32),
    b: (out,) f32.  Returns (M, N) f32.
    """
    assert len(params) == 3, "fused kernel is specialized to 3 Linear layers"
    (w1, b1), (w2, b2), (w3, b3) = params
    M, K0 = x.shape
    assert w1.shape[0] == K0
    assert w2.shape[0] == w1.shape[1]
    assert w3.shape[0] == w2.shape[1]
    N = w3.shape[1]

    # Biases as (1, N) f32 so they broadcast over rows with a (sublane, lane)
    # layout and the adds stay in f32.
    b1r = b1.reshape(1, -1).astype(jnp.float32)
    b2r = b2.reshape(1, -1).astype(jnp.float32)
    b3r = b3.reshape(1, -1).astype(jnp.float32)

    # Advisory cost hint: lets XLA overlap this call's weight DMA with
    # neighboring ops.
    flops = 2 * M * (K0 * w1.shape[1]
                     + w1.shape[1] * w2.shape[1]
                     + w2.shape[1] * w3.shape[1])
    bytes_accessed = (
        w1.size * w1.dtype.itemsize
        + w2.size * w2.dtype.itemsize
        + w3.size * w3.dtype.itemsize
        + x.size * x.dtype.itemsize
        + (b1.size + b2.size + b3.size) * 4
        + M * N * 4)
    cost = pl.CostEstimate(flops=flops, transcendentals=0,
                           bytes_accessed=bytes_accessed)

    vmem = pl.BlockSpec(memory_space=pltpu.MemorySpace.VMEM)

    return pl.pallas_call(
        _fused_mlp_kernel,
        out_shape=jax.ShapeDtypeStruct((M, N), jnp.float32),
        in_specs=[vmem] * 7,      # x, W1, b1, W2, b2, W3, b3 — full VMEM blocks
        out_specs=vmem,
        cost_estimate=cost,
    )(x, w1, b1r, w2, b2r, w3, b3r)


# ------------------------------ MLP wrapper ------------------------------- #
def init_mlp_params(key, input_size=1536, hidden_layers=(512, 512, 512),
                    dtype=jnp.float32):
    """PyTorch-style uniform(-1/sqrt(fan_in), 1/sqrt(fan_in)) init, f32."""
    params = []
    last = input_size
    for h in hidden_layers:
        key, kw, kb = jax.random.split(key, 3)
        bound = 1.0 / np.sqrt(last)
        w = jax.random.uniform(kw, (last, h), dtype, minval=-bound, maxval=bound)
        b = jax.random.uniform(kb, (h,), dtype, minval=-bound, maxval=bound)
        params.append((w, b))
        last = h
    return params


def to_inference_params(params, weight_dtype=jnp.bfloat16):
    """Cast weights once to the storage/compute dtype; biases stay f32."""
    return [(w.astype(weight_dtype), b.astype(jnp.float32)) for w, b in params]


@jax.jit
def mlp_forward(x, params):
    # Sequential of Linear layers only (no activations), matching the module,
    # fused into a single Pallas kernel.
    return mlp_pallas(x, params)


def mlp_reference_f32(x, params):
    """Pure-f32 reference (matches the PyTorch module's math)."""
    for w, b in params:
        x = x @ w + b
    return x


def mlp_reference_bf16(x, params_bf16):
    """XLA reference with the same bf16-operand / f32-accumulate recipe."""
    h = x
    for w, b in params_bf16:
        h = jnp.dot(h.astype(jnp.bfloat16), w,
                    preferred_element_type=jnp.float32) + b
    return h


# --------------------------------- main ----------------------------------- #
if __name__ == "__main__":
    key = jax.random.PRNGKey(0)
    kx, kp = jax.random.split(key)

    batch = 8
    input_size = 1536
    hidden_layers = (512, 512, 512)

    x = jax.random.normal(kx, (batch, input_size), jnp.float32)
    params_f32 = init_mlp_params(kp, input_size, hidden_layers)
    params = to_inference_params(params_f32)   # bf16 weights, f32 biases

    y = mlp_forward(x, params)
    y = jax.block_until_ready(y)
    assert y.shape == (batch, hidden_layers[-1])
    assert y.dtype == jnp.float32

    # 1) Same-recipe check (bf16 operands, f32 accumulation) — tight tolerance.
    y_bf16_ref = mlp_reference_bf16(x, params)
    np.testing.assert_allclose(np.asarray(y), np.asarray(y_bf16_ref),
                               rtol=1e-2, atol=1e-2)

    # 2) Accuracy check against the full-f32 module math — bf16-appropriate
    #    tolerance.
    y_f32_ref = mlp_reference_f32(x, params_f32)
    np.testing.assert_allclose(np.asarray(y), np.asarray(y_f32_ref),
                               rtol=5e-2, atol=5e-2)

    print("KERNEL_OK")
</pallas_src>

<mosaic_0001>
module attributes {stable_mosaic.version = 11 : i64} {
  func.func @_fused_mlp_kernel(%arg0: memref<8x1536xf32, #tpu.memory_space<vmem>>, %arg1: memref<1536x512xbf16, #tpu.memory_space<vmem>>, %arg2: memref<1x512xf32, #tpu.memory_space<vmem>>, %arg3: memref<512x512xbf16, #tpu.memory_space<vmem>>, %arg4: memref<1x512xf32, #tpu.memory_space<vmem>>, %arg5: memref<512x512xbf16, #tpu.memory_space<vmem>>, %arg6: memref<1x512xf32, #tpu.memory_space<vmem>>, %arg7: memref<8x512xf32, #tpu.memory_space<vmem>>) attributes {dimension_semantics = [], scalar_prefetch = 0 : i64, scratch_operands = 0 : i64, tpu.core_type = #tpu.core_type<tc>} {
    %c0 = arith.constant 0 : index
    %c0_0 = arith.constant 0 : index
    %0 = vector.load %arg0[%c0, %c0_0] : memref<8x1536xf32, #tpu.memory_space<vmem>>, vector<8x1536xf32>
    %1 = arith.truncf %0 : vector<8x1536xf32> to vector<8x1536xbf16>
    %c0_1 = arith.constant 0 : index
    %c0_2 = arith.constant 0 : index
    %2 = vector.load %arg1[%c0_1, %c0_2] : memref<1536x512xbf16, #tpu.memory_space<vmem>>, vector<1536x512xbf16>
    %cst = arith.constant dense<0.000000e+00> : vector<8x512xf32>
    %3 = tpu.matmul %1, %2, %cst {dimension_numbers = #tpu.dot_dimension_numbers<[1], [0], [0], [1], [0, 0, 1, 1], [], []>} : vector<8x1536xbf16>, vector<1536x512xbf16>, vector<8x512xf32> -> vector<8x512xf32>
    %c0_3 = arith.constant 0 : index
    %c0_4 = arith.constant 0 : index
    %4 = vector.load %arg2[%c0_3, %c0_4] : memref<1x512xf32, #tpu.memory_space<vmem>>, vector<1x512xf32>
    %5 = vector.broadcast %4 : vector<1x512xf32> to vector<8x512xf32>
    %6 = arith.addf %3, %5 : vector<8x512xf32>
    %7 = arith.truncf %6 : vector<8x512xf32> to vector<8x512xbf16>
    %c0_5 = arith.constant 0 : index
    %c0_6 = arith.constant 0 : index
    %8 = vector.load %arg3[%c0_5, %c0_6] : memref<512x512xbf16, #tpu.memory_space<vmem>>, vector<512x512xbf16>
    %cst_7 = arith.constant dense<0.000000e+00> : vector<8x512xf32>
    %9 = tpu.matmul %7, %8, %cst_7 {dimension_numbers = #tpu.dot_dimension_numbers<[1], [0], [0], [1], [0, 0, 1, 1], [], []>} : vector<8x512xbf16>, vector<512x512xbf16>, vector<8x512xf32> -> vector<8x512xf32>
    %c0_8 = arith.constant 0 : index
    %c0_9 = arith.constant 0 : index
    %10 = vector.load %arg4[%c0_8, %c0_9] : memref<1x512xf32, #tpu.memory_space<vmem>>, vector<1x512xf32>
    %11 = vector.broadcast %10 : vector<1x512xf32> to vector<8x512xf32>
    %12 = arith.addf %9, %11 : vector<8x512xf32>
    %13 = arith.truncf %12 : vector<8x512xf32> to vector<8x512xbf16>
    %c0_10 = arith.constant 0 : index
    %c0_11 = arith.constant 0 : index
    %14 = vector.load %arg5[%c0_10, %c0_11] : memref<512x512xbf16, #tpu.memory_space<vmem>>, vector<512x512xbf16>
    %cst_12 = arith.constant dense<0.000000e+00> : vector<8x512xf32>
    %15 = tpu.matmul %13, %14, %cst_12 {dimension_numbers = #tpu.dot_dimension_numbers<[1], [0], [0], [1], [0, 0, 1, 1], [], []>} : vector<8x512xbf16>, vector<512x512xbf16>, vector<8x512xf32> -> vector<8x512xf32>
    %c0_13 = arith.constant 0 : index
    %c0_14 = arith.constant 0 : index
    %16 = vector.load %arg6[%c0_13, %c0_14] : memref<1x512xf32, #tpu.memory_space<vmem>>, vector<1x512xf32>
    %17 = vector.broadcast %16 : vector<1x512xf32> to vector<8x512xf32>
    %18 = arith.addf %15, %17 : vector<8x512xf32>
    %c0_15 = arith.constant 0 : index
    %c0_16 = arith.constant 0 : index
    %19 = vector.load %arg7[%c0_15, %c0_16] : memref<8x512xf32, #tpu.memory_space<vmem>>, vector<8x512xf32>
    tpu.vector_store %arg7[%c0_15, %c0_16], %18 {strides = array<i32>} : memref<8x512xf32, #tpu.memory_space<vmem>>, vector<8x512xf32>,
    return
  }
}

</mosaic_0001>

<bundles_post_ra>
// kernel: mlp_forward.1
= control target key start
LH: loop header
LB: loop body
LE: loop exit
PB: predicated region body
PF: predicated region fallthrough
CT: control target
= control target key end

     0   :  { %12 = vsyncpa [#allocation3], 0  ;;  %s6957_s0 = inlined_call_operand.hbm [shape: f32[8,1536], index: 0, kind: input, shape index: {}]   ;;  %s6958_s1 = inlined_call_operand.hbm [shape: bf16[1536,512], index: 1, kind: input, shape index: {}]   ;;  %s6959_s2 = inlined_call_operand.hbm [shape: f32[1,512], index: 2, kind: input, shape index: {}]   ;;  %s6960_s3 = inlined_call_operand.hbm [shape: bf16[512,512], index: 3, kind: input, shape index: {}]   ;;  %s6961_s4 = inlined_call_operand.hbm [shape: f32[1,512], index: 4, kind: input, shape index: {}]   ;;  %s6962_s5 = inlined_call_operand.hbm [shape: bf16[512,512], index: 5, kind: input, shape index: {}]   ;;  %s6963_s6 = inlined_call_operand.hbm [shape: f32[1,512], index: 6, kind: input, shape index: {}]   ;;  %s6964_s7 = inlined_call_operand.hbm [shape: f32[8,512], index: 7, kind: output, shape index: {}]  }
   0x1   :  { %13 = vsyncpa [#allocation6], 0 }
   0x2   :  { %14 = vsyncpa [#allocation9], 0 }
   0x3   :  { %15 = vsyncpa [#allocation12], 0 }
   0x4   :  { %16 = vsyncpa [#allocation4], 0  ;;  %s6758_s24 = smov [#allocation5]   ;;  %s6572_s28 = scalar_lea.hbm %s6958_s1, 49152 }
   0x5   :  { %s32_s25 = sshll.u32 %s6758_s24, 4  ;;  %p6573_p0 = scmp.ne.s32.totalorder %s6958_s1, %s6572_s28  ;;  %s33_s25 = int_to_ptr.vmem [resolvable:$true] %s32_s25 }
   0x6   :  { %p6576_p1 = scmp.lt.u32.totalorder %s6572_s28, %s6958_s1 }
   0x8   :  { %p6578_p2 = pnand %p6576_p1, %p6573_p0 }
   0xa   :  { %6581 = shalt.err (!%p6578_p2)
}
   0xb   :  { %s6582_s10 = scalar_lea.vmem %s33_s25, 49152  ;;  %p6587_p4 = scmp.lt.s32.totalorder %s33_s25, %s33_s25 }
   0xc   :  { %p6583_p3 = scmp.ne.s32.totalorder %s33_s25, %s6582_s10  ;;  %p6588_p5 = scmp.lt.s32.totalorder %s6582_s10, %s6582_s10 }
   0xe   :  { %p6589_p6 = por %p6588_p5, %p6587_p4 }
  0x10   :  { %p6590_p7 = pnand %p6589_p6, %p6583_p3 }
  0x12   :  { %6593 = shalt.err (!%p6590_p7)
}
  0x13   :  { %s6759_s11 = smov 256   ;;  %s6760_s12 = smov 16  }
  0x14   :  { %38 = dma.hbm_to_vmem [thread:$0]  %s6958_s1, 49152, %s33_s25, [#allocation6], %s6759_s11, %s6759_s11, %s6760_s12  }
  0x15   :  { %s6761_s15 = smov [#allocation8]   ;;  %s6762_s17 = smov [#allocation11]  }
  0x16   :  { %s54_s16 = sshll.u32 %s6761_s15, 4  ;;  %s76_s18 = sshll.u32 %s6762_s17, 4  ;;  %s55_s16 = int_to_ptr.vmem [resolvable:$true] %s54_s16  ;;  %s77_s18 = int_to_ptr.vmem [resolvable:$true] %s76_s18 }
  0x17   :  { %s6594_s21 = scalar_lea.hbm %s6960_s3, 16384 }
  0x18   :  { %p6595_p8 = scmp.ne.s32.totalorder %s6960_s3, %s6594_s21  ;;  %p6598_p9 = scmp.lt.u32.totalorder %s6594_s21, %s6960_s3 }
  0x1a   :  { %p6600_p10 = pnand %p6598_p9, %p6595_p8 }
  0x1c   :  { %6603 = shalt.err (!%p6600_p10)
}
  0x1d   :  { %s6604_s1 = scalar_lea.vmem %s55_s16, 16384  ;;  %p6609_p12 = scmp.lt.s32.totalorder %s55_s16, %s55_s16 }
  0x1e   :  { %p6605_p11 = scmp.ne.s32.totalorder %s55_s16, %s6604_s1  ;;  %p6610_p13 = scmp.lt.s32.totalorder %s6604_s1, %s6604_s1 }
  0x20   :  { %p6611_p0 = por %p6610_p13, %p6609_p12 }
  0x22   :  { %p6612_p1 = pnand %p6611_p0, %p6605_p11 }
  0x24   :  { %6615 = shalt.err (!%p6612_p1)
}
  0x25   :  { %60 = dma.hbm_to_vmem [thread:$0]  %s6960_s3, 16384, %s55_s16, [#allocation9], %s6759_s11, %s6759_s11, %s6760_s12  }
  0x26   :  { %s6616_s30 = scalar_lea.hbm %s6962_s5, 16384 }
  0x27   :  { %p6617_p2 = scmp.ne.s32.totalorder %s6962_s5, %s6616_s30  ;;  %p6620_p3 = scmp.lt.u32.totalorder %s6616_s30, %s6962_s5 }
  0x29   :  { %p6622_p4 = pnand %p6620_p3, %p6617_p2 }
  0x2b   :  { %6625 = shalt.err (!%p6622_p4)
}
  0x2c   :  { %s6626_s14 = scalar_lea.vmem %s77_s18, 16384  ;;  %p6631_p6 = scmp.lt.s32.totalorder %s77_s18, %s77_s18 }
  0x2d   :  { %p6627_p5 = scmp.ne.s32.totalorder %s77_s18, %s6626_s14  ;;  %p6632_p7 = scmp.lt.s32.totalorder %s6626_s14, %s6626_s14 }
  0x2f   :  { %p6633_p8 = por %p6632_p7, %p6631_p6 }
  0x31   :  { %p6634_p9 = pnand %p6633_p8, %p6627_p5 }
  0x33   :  { %6637 = shalt.err (!%p6634_p9)
}
  0x34   :  { %82 = dma.hbm_to_vmem [thread:$0]  %s6962_s5, 16384, %s77_s18, [#allocation12], %s6759_s11, %s6759_s11, %s6760_s12  }
  0x35   :  { %s6763_s16 = smov [#allocation2]   ;;  %s6764_s19 = smov [#allocation7]  }
  0x36   :  { %s23_s17 = sshll.u32 %s6763_s16, 4  ;;  %s45_s20 = sshll.u32 %s6764_s19, 4  ;;  %s24_s17 = int_to_ptr.vmem [resolvable:$true] %s23_s17  ;;  %s46_s20 = int_to_ptr.vmem [resolvable:$true] %s45_s20 }
  0x37   :  { %s6638_s23 = scalar_lea.hbm %s6957_s0, 1536 }
  0x38   :  { %p6639_p10 = scmp.ne.s32.totalorder %s6957_s0, %s6638_s23  ;;  %p6642_p11 = scmp.lt.u32.totalorder %s6638_s23, %s6957_s0 }
  0x3a   :  { %p6644_p12 = pnand %p6642_p11, %p6639_p10 }
  0x3c   :  { %6647 = shalt.err (!%p6644_p12)
}
  0x3d   :  { %s6648_s5 = scalar_lea.vmem %s24_s17, 1536  ;;  %p6653_p0 = scmp.lt.s32.totalorder %s24_s17, %s24_s17 }
  0x3e   :  { %p6649_p13 = scmp.ne.s32.totalorder %s24_s17, %s6648_s5  ;;  %p6654_p1 = scmp.lt.s32.totalorder %s6648_s5, %s6648_s5 }
  0x40   :  { %p6655_p2 = por %p6654_p1, %p6653_p0 }
  0x42   :  { %p6656_p3 = pnand %p6655_p2, %p6649_p13 }
  0x44   :  { %6659 = shalt.err (!%p6656_p3)
}
  0x45   :  { %26 = dma.hbm_to_vmem [thread:$0]  %s6957_s0, 1536, %s24_s17, [#allocation3]  }
  0x46   :  { %s6660_s28 = scalar_lea.hbm %s6959_s2, 64 }
  0x47   :  { %p6661_p4 = scmp.ne.s32.totalorder %s6959_s2, %s6660_s28  ;;  %p6664_p5 = scmp.lt.u32.totalorder %s6660_s28, %s6959_s2 }
  0x49   :  { %p6666_p6 = pnand %p6664_p5, %p6661_p4 }
  0x4b   :  { %6669 = shalt.err (!%p6666_p6)
}
  0x4c   :  { %s6670_s10 = scalar_lea.vmem %s46_s20, 64  ;;  %p6675_p8 = scmp.lt.s32.totalorder %s46_s20, %s46_s20 }
  0x4d   :  { %p6671_p7 = scmp.ne.s32.totalorder %s46_s20, %s6670_s10  ;;  %p6676_p9 = scmp.lt.s32.totalorder %s6670_s10, %s6670_s10 }
  0x4f   :  { %p6677_p10 = por %p6676_p9, %p6675_p8 }
  0x51   :  { %p6678_p11 = pnand %p6677_p10, %p6671_p7 }
  0x53   :  { %6681 = shalt.err (!%p6678_p11)
}
  0x54   :  { %48 = dma.hbm_to_vmem [thread:$0]  %s6959_s2, 64, %s46_s20, [#allocation6]  }
  0x55   :  { %s6765_s14 = smov [#allocation10]   ;;  %s6766_s15 = smov [#allocation13]  }
  0x56   :  { %s67_s3 = sshll.u32 %s6765_s14, 4  ;;  %s89_s16 = sshll.u32 %s6766_s15, 4  ;;  %s68_s3 = int_to_ptr.vmem [resolvable:$true] %s67_s3  ;;  %s90_s16 = int_to_ptr.vmem [resolvable:$true] %s89_s16 }
  0x57   :  { %s6682_s21 = scalar_lea.hbm %s6961_s4, 64 }
  0x58   :  { %p6683_p12 = scmp.ne.s32.totalorder %s6961_s4, %s6682_s21  ;;  %p6686_p13 = scmp.lt.u32.totalorder %s6682_s21, %s6961_s4 }
  0x5a   :  { %p6688_p0 = pnand %p6686_p13, %p6683_p12 }
  0x5c   :  { %6691 = shalt.err (!%p6688_p0)
}
  0x5d   :  { %s6692_s2 = scalar_lea.vmem %s68_s3, 64  ;;  %p6697_p2 = scmp.lt.s32.totalorder %s68_s3, %s68_s3 }
  0x5e   :  { %p6693_p1 = scmp.ne.s32.totalorder %s68_s3, %s6692_s2  ;;  %p6698_p3 = scmp.lt.s32.totalorder %s6692_s2, %s6692_s2 }
  0x60   :  { %p6699_p4 = por %p6698_p3, %p6697_p2 }
  0x62   :  { %p6700_p5 = pnand %p6699_p4, %p6693_p1 }
  0x64   :  { %6703 = shalt.err (!%p6700_p5)
}
  0x65   :  { %70 = dma.hbm_to_vmem [thread:$0]  %s6961_s4, 64, %s68_s3, [#allocation9]  }
  0x66   :  { %s6704_s11 = scalar_lea.hbm %s6963_s6, 64 }
  0x67   :  { %p6705_p6 = scmp.ne.s32.totalorder %s6963_s6, %s6704_s11  ;;  %p6708_p7 = scmp.lt.u32.totalorder %s6704_s11, %s6963_s6 }
  0x69   :  { %p6710_p8 = pnand %p6708_p7, %p6705_p6 }
  0x6b   :  { %6713 = shalt.err (!%p6710_p8)
}
  0x6c   :  { %s6714_s29 = scalar_lea.vmem %s90_s16, 64  ;;  %p6719_p10 = scmp.lt.s32.totalorder %s90_s16, %s90_s16 }
  0x6d   :  { %p6715_p9 = scmp.ne.s32.totalorder %s90_s16, %s6714_s29  ;;  %p6720_p11 = scmp.lt.s32.totalorder %s6714_s29, %s6714_s29 }
  0x6f   :  { %p6721_p12 = por %p6720_p11, %p6719_p10 }
  0x71   :  { %p6722_p13 = pnand %p6721_p12, %p6715_p9 }
  0x73   :  { %6725 = shalt.err (!%p6722_p13)
}
  0x74   :  { %92 = dma.hbm_to_vmem [thread:$0]  %s6963_s6, 64, %s90_s16, [#allocation12]  }
  0x75   :  { %6748 = dma.done.wait [#allocation3], 1536  }
  0x76   :  { %6749 = vsyncadd [#allocation3], 4294965760 }
  0x77   :  { %6750 = dma.done.wait [#allocation6], 49216  }
  0x78   :  { %6751 = vsyncadd [#allocation6], 4294918080 }
  0x79   :  { %6752 = dma.done.wait [#allocation9], 16448  }
  0x7a   :  { %6753 = vsyncadd [#allocation9], 4294950848 }
  0x7b   :  { %6754 = dma.done.wait [#allocation12], 16448  }
  0x7c   :  { %6755 = vsyncadd [#allocation12], 4294950848  ;;  %v5612_v0 = vld [vmem:[#allocation5 + $0x4] ss:$16 sps:$4 sm:$0xff]   ;;  %v5614_v1 = vld [vmem:[#allocation5 + $0xc] ss:$16 sps:$4 sm:$0xff]  }
  0x7d   :  { %2464 = vmatprep.subr.bf16.mxu0 %v5612_v0  ;;  %v5616_v2 = vld [vmem:[#allocation5] ss:$16 sps:$4 sm:$0xff]   ;;  %v5617_v3 = vld [vmem:[#allocation5 + $0x8] ss:$16 sps:$4 sm:$0xff]   ;;  %2710 = vmatprep.subr.bf16.mxu1 %v5614_v1  ;;  %v5618_v4 = vld [vmem:[#allocation5 + $0x24] ss:$16 sps:$4 sm:$0xff]  }
  0x7e   :  { %2465 = vmatpush1.bf16.msra.mxu0 %v5616_v2  ;;  %2711 = vmatpush1.bf16.msra.mxu1 %v5617_v3  ;;  %v5620_v5 = vld [vmem:[#allocation5 + $0x2c] ss:$16 sps:$4 sm:$0xff]   ;;  %v5622_v6 = vld [vmem:[#allocation5 + $0x20] ss:$16 sps:$4 sm:$0xff]   ;;  %v5623_v7 = vld [vmem:[#allocation5 + $0x28] ss:$16 sps:$4 sm:$0xff]  }
  0x7f   :  { %2466 = vmatprep.subr.bf16.mxu0 %v5618_v4  ;;  %2712 = vmatprep.subr.bf16.mxu1 %v5620_v5  ;;  %v5624_v8 = vld [vmem:[#allocation5 + $0x44] ss:$16 sps:$4 sm:$0xff]   ;;  %v5626_v9 = vld [vmem:[#allocation5 + $0x4c] ss:$16 sps:$4 sm:$0xff]   ;;  %v5628_v10 = vld [vmem:[#allocation5 + $0x40] ss:$16 sps:$4 sm:$0xff]  }
  0x80   :  { %v5629_v11 = vld [vmem:[#allocation5 + $0x48] ss:$16 sps:$4 sm:$0xff]   ;;  %v5630_v12 = vld [vmem:[#allocation5 + $0x64] ss:$16 sps:$4 sm:$0xff]   ;;  %v5632_v13 = vld [vmem:[#allocation5 + $0x6c] ss:$16 sps:$4 sm:$0xff]  }
  0x81   :  { %v5634_v14 = vld [vmem:[#allocation5 + $0x60] ss:$16 sps:$4 sm:$0xff]   ;;  %v5635_v15 = vld [vmem:[#allocation5 + $0x68] ss:$16 sps:$4 sm:$0xff]   ;;  %v5636_v16 = vld [vmem:[#allocation5 + $0x84] ss:$16 sps:$4 sm:$0xff]  }
  0x82   :  { %2467 = vmatpush1.bf16.msra.mxu0 %v5622_v6  ;;  %2713 = vmatpush1.bf16.msra.mxu1 %v5623_v7  ;;  %v5638_v17 = vld [vmem:[#allocation5 + $0x8c] ss:$16 sps:$4 sm:$0xff]   ;;  %v5640_v18 = vld [vmem:[#allocation5 + $0x80] ss:$16 sps:$4 sm:$0xff]   ;;  %v5641_v19 = vld [vmem:[#allocation5 + $0x88] ss:$16 sps:$4 sm:$0xff]  }
  0x83   :  { %2468 = vmatprep.subr.bf16.mxu0 %v5624_v8  ;;  %2714 = vmatprep.subr.bf16.mxu1 %v5626_v9  ;;  %v5642_v20 = vld [vmem:[#allocation5 + $0xa4] ss:$16 sps:$4 sm:$0xff]   ;;  %v5644_v21 = vld [vmem:[#allocation5 + $0xac] ss:$16 sps:$4 sm:$0xff]   ;;  %v5646_v22 = vld [vmem:[#allocation5 + $0xa0] ss:$16 sps:$4 sm:$0xff]  }
  0x84   :  { %v5647_v23 = vld [vmem:[#allocation5 + $0xa8] ss:$16 sps:$4 sm:$0xff]   ;;  %v5648_v24 = vld [vmem:[#allocation5 + $0xc4] ss:$16 sps:$4 sm:$0xff]   ;;  %v5650_v25 = vld [vmem:[#allocation5 + $0xcc] ss:$16 sps:$4 sm:$0xff]  }
  0x85   :  { %v5652_v26 = vld [vmem:[#allocation5 + $0xc0] ss:$16 sps:$4 sm:$0xff]   ;;  %v5653_v27 = vld [vmem:[#allocation5 + $0xc8] ss:$16 sps:$4 sm:$0xff]   ;;  %v5654_v28 = vld [vmem:[#allocation5 + $0xe4] ss:$16 sps:$4 sm:$0xff]  }
  0x86   :  { %2469 = vmatpush1.bf16.msra.mxu0 %v5628_v10  ;;  %2715 = vmatpush1.bf16.msra.mxu1 %v5629_v11  ;;  %v5656_v29 = vld [vmem:[#allocation5 + $0xec] ss:$16 sps:$4 sm:$0xff]   ;;  %v5658_v30 = vld [vmem:[#allocation5 + $0xe0] ss:$16 sps:$4 sm:$0xff]   ;;  %v5659_v31 = vld [vmem:[#allocation5 + $0xe8] ss:$16 sps:$4 sm:$0xff]  }
  0x87   :  { %2470 = vmatprep.subr.bf16.mxu0 %v5630_v12  ;;  %2716 = vmatprep.subr.bf16.mxu1 %v5632_v13  ;;  %v5660_v32 = vld [vmem:[#allocation5 + $0x104] ss:$16 sps:$4 sm:$0xff]   ;;  %v5662_v33 = vld [vmem:[#allocation5 + $0x10c] ss:$16 sps:$4 sm:$0xff]   ;;  %v5664_v34 = vld [vmem:[#allocation5 + $0x100] ss:$16 sps:$4 sm:$0xff]  }
  0x88   :  { %v5665_v35 = vld [vmem:[#allocation5 + $0x108] ss:$16 sps:$4 sm:$0xff]   ;;  %v5666_v36 = vld [vmem:[#allocation5 + $0x124] ss:$16 sps:$4 sm:$0xff]   ;;  %v5668_v37 = vld [vmem:[#allocation5 + $0x12c] ss:$16 sps:$4 sm:$0xff]  }
  0x89   :  { %v5670_v38 = vld [vmem:[#allocation5 + $0x120] ss:$16 sps:$4 sm:$0xff]   ;;  %v5671_v39 = vld [vmem:[#allocation5 + $0x128] ss:$16 sps:$4 sm:$0xff]   ;;  %v5672_v40 = vld [vmem:[#allocation5 + $0x144] ss:$16 sps:$4 sm:$0xff]  }
  0x8a   :  { %2471 = vmatpush1.bf16.msra.mxu0 %v5634_v14  ;;  %2717 = vmatpush1.bf16.msra.mxu1 %v5635_v15  ;;  %v5674_v41 = vld [vmem:[#allocation5 + $0x14c] ss:$16 sps:$4 sm:$0xff]   ;;  %v5676_v42 = vld [vmem:[#allocation5 + $0x140] ss:$16 sps:$4 sm:$0xff]   ;;  %v5677_v43 = vld [vmem:[#allocation5 + $0x148] ss:$16 sps:$4 sm:$0xff]  }
  0x8b   :  { %2472 = vmatprep.subr.bf16.mxu0 %v5636_v16  ;;  %2718 = vmatprep.subr.bf16.mxu1 %v5638_v17  ;;  %v5678_v44 = vld [vmem:[#allocation5 + $0x164] ss:$16 sps:$4 sm:$0xff]   ;;  %v5680_v45 = vld [vmem:[#allocation5 + $0x16c] ss:$16 sps:$4 sm:$0xff]   ;;  %v5682_v47 = vld [vmem:[#allocation5 + $0x160] ss:$16 sps:$4 sm:$0xff]  }
  0x8c   :  { %v115_v46 = vld [vmem:[#allocation2 + $0x8] sm:$0xff]  ;;  %v5684_v50 = vld [vmem:[#allocation5 + $0x184] ss:$16 sps:$4 sm:$0xff]   ;;  %v5688_v52 = vld [vmem:[#allocation5 + $0x180] ss:$16 sps:$4 sm:$0xff]   ;;  %s6767_s6 = smov [#allocation14]  }
  0x8d   :  { %v127_v48 = vpack.c.bf16 %v115_v46, %v115_v46  ;;  %v5683_v49 = vld [vmem:[#allocation5 + $0x168] ss:$16 sps:$4 sm:$0xff]   ;;  %v5686_v51 = vld [vmem:[#allocation5 + $0x18c] ss:$16 sps:$4 sm:$0xff]   ;;  %v5690_v54 = vld [vmem:[#allocation5 + $0x1a4] ss:$16 sps:$4 sm:$0xff]  }
  0x8e   :  { %2473 = vmatpush1.bf16.msra.mxu0 %v5640_v18  ;;  %2719 = vmatpush1.bf16.msra.mxu1 %v5641_v19  ;;  %v5689_v53 = vld [vmem:[#allocation5 + $0x188] ss:$16 sps:$4 sm:$0xff]   ;;  %v5692_v55 = vld [vmem:[#allocation5 + $0x1ac] ss:$16 sps:$4 sm:$0xff]   ;;  %v5694_v56 = vld [vmem:[#allocation5 + $0x1a0] ss:$16 sps:$4 sm:$0xff]  }
  0x8f   :  { %2474 = vmatprep.subr.bf16.mxu0 %v5642_v20  ;;  %2720 = vmatprep.subr.bf16.mxu1 %v5644_v21  ;;  %v5695_v57 = vld [vmem:[#allocation5 + $0x1a8] ss:$16 sps:$4 sm:$0xff]   ;;  %v5696_v58 = vld [vmem:[#allocation5 + $0x1c4] ss:$16 sps:$4 sm:$0xff]   ;;  %v5698_v59 = vld [vmem:[#allocation5 + $0x1cc] ss:$16 sps:$4 sm:$0xff]  }
  0x90   :  { %2496 = vmatprep.mubr.bf16.mxu0 %v127_v48  ;;  %2742 = vmatprep.mubr.bf16.mxu1 %v127_v48  ;;  %v5700_v60 = vld [vmem:[#allocation5 + $0x1c0] ss:$16 sps:$4 sm:$0xff]   ;;  %v5701_v61 = vld [vmem:[#allocation5 + $0x1c8] ss:$16 sps:$4 sm:$0xff]   ;;  %v5702_v62 = vld [vmem:[#allocation5 + $0x1e4] ss:$16 sps:$4 sm:$0xff]  }
  0x91   :  { %v5704_v63 = vld [vmem:[#allocation5 + $0x1ec] ss:$16 sps:$4 sm:$0xff]   ;;  %v5706_v0 = vld [vmem:[#allocation5 + $0x1e0] ss:$16 sps:$4 sm:$0xff]   ;;  %v5707_v1 = vld [vmem:[#allocation5 + $0x1e8] ss:$16 sps:$4 sm:$0xff]  }
  0x92   :  { %2475 = vmatpush1.bf16.msra.mxu0 %v5646_v22  ;;  %2721 = vmatpush1.bf16.msra.mxu1 %v5647_v23  ;;  %v114_v2 = vld [vmem:[#allocation2] sm:$0xff]  ;;  %v5713_v4 = vld [vmem:[#allocation5 + $0x20c] ss:$16 sps:$4 sm:$0xff]   ;;  %v5711_v7 = vld [vmem:[#allocation5 + $0x208] ss:$16 sps:$4 sm:$0xff]   ;;  %s4882_s8 = sshll.u32 %s6767_s6, 4  ;;  %s4883_s8 = int_to_ptr.vmem [resolvable:$true] %s4882_s8 }
  0x93   :  { %2476 = vmatprep.subr.bf16.mxu0 %v5648_v24  ;;  %2722 = vmatprep.subr.bf16.mxu1 %v5650_v25  ;;  %v5710_v3 = vld [vmem:[#allocation5 + $0x204] ss:$16 sps:$4 sm:$0xff]   ;;  %v126_v5 = vpack.c.bf16 %v114_v2, %v114_v2  ;;  %v5708_v6 = vld [vmem:[#allocation5 + $0x200] ss:$16 sps:$4 sm:$0xff]   ;;  %v5719_v9 = vld [vmem:[#allocation5 + $0x22c] ss:$16 sps:$4 sm:$0xff]   ;;  %p6731_p1 = scmp.lt.s32.totalorder %s4883_s8, %s4883_s8 }
  0x94   :  { %v5716_v8 = vld [vmem:[#allocation5 + $0x224] ss:$16 sps:$4 sm:$0xff]   ;;  %v5714_v10 = vld [vmem:[#allocation5 + $0x220] ss:$16 sps:$4 sm:$0xff]   ;;  %v5717_v11 = vld [vmem:[#allocation5 + $0x228] ss:$16 sps:$4 sm:$0xff]  }
  0x95   :  { %v5722_v12 = vld [vmem:[#allocation5 + $0x244] ss:$16 sps:$4 sm:$0xff]   ;;  %v5725_v13 = vld [vmem:[#allocation5 + $0x24c] ss:$16 sps:$4 sm:$0xff]   ;;  %v5720_v14 = vld [vmem:[#allocation5 + $0x240] ss:$16 sps:$4 sm:$0xff]  }
  0x96   :  { %2477 = vmatpush1.bf16.msra.mxu0 %v5652_v26  ;;  %2723 = vmatpush1.bf16.msra.mxu1 %v5653_v27  ;;  %v5723_v15 = vld [vmem:[#allocation5 + $0x248] ss:$16 sps:$4 sm:$0xff]   ;;  %v5728_v16 = vld [vmem:[#allocation5 + $0x264] ss:$16 sps:$4 sm:$0xff]   ;;  %v5731_v17 = vld [vmem:[#allocation5 + $0x26c] ss:$16 sps:$4 sm:$0xff]  }
  0x97   :  { %2478 = vmatprep.subr.bf16.mxu0 %v5654_v28  ;;  %2724 = vmatprep.subr.bf16.mxu1 %v5656_v29  ;;  %v5726_v18 = vld [vmem:[#allocation5 + $0x260] ss:$16 sps:$4 sm:$0xff]   ;;  %v5729_v19 = vld [vmem:[#allocation5 + $0x268] ss:$16 sps:$4 sm:$0xff]   ;;  %v5734_v20 = vld [vmem:[#allocation5 + $0x284] ss:$16 sps:$4 sm:$0xff]  }
  0x98   :  { %v5737_v21 = vld [vmem:[#allocation5 + $0x28c] ss:$16 sps:$4 sm:$0xff]   ;;  %v5732_v22 = vld [vmem:[#allocation5 + $0x280] ss:$16 sps:$4 sm:$0xff]   ;;  %v5735_v23 = vld [vmem:[#allocation5 + $0x288] ss:$16 sps:$4 sm:$0xff]  }
  0x99   :  { %v5740_v24 = vld [vmem:[#allocation5 + $0x2a4] ss:$16 sps:$4 sm:$0xff]   ;;  %v5743_v25 = vld [vmem:[#allocation5 + $0x2ac] ss:$16 sps:$4 sm:$0xff]   ;;  %v5738_v26 = vld [vmem:[#allocation5 + $0x2a0] ss:$16 sps:$4 sm:$0xff]  }
  0x9a   :  { %2479 = vmatpush1.bf16.msra.mxu0 %v5658_v30  ;;  %2725 = vmatpush1.bf16.msra.mxu1 %v5659_v31  ;;  %v5741_v27 = vld [vmem:[#allocation5 + $0x2a8] ss:$16 sps:$4 sm:$0xff]   ;;  %v5746_v28 = vld [vmem:[#allocation5 + $0x2c4] ss:$16 sps:$4 sm:$0xff]   ;;  %v5749_v29 = vld [vmem:[#allocation5 + $0x2cc] ss:$16 sps:$4 sm:$0xff]  }
  0x9b   :  { %2480 = vmatprep.subr.bf16.mxu0 %v5660_v32  ;;  %2726 = vmatprep.subr.bf16.mxu1 %v5662_v33  ;;  %v117_v30 = vld [vmem:[#allocation2 + $0x18] sm:$0xff]  ;;  %v5744_v31 = vld [vmem:[#allocation5 + $0x2c0] ss:$16 sps:$4 sm:$0xff]   ;;  %v5770_v46 = vld [vmem:[#allocation5 + $0x344] ss:$16 sps:$4 sm:$0xff]   ;;  %s6726_s9 = scalar_lea.vmem %s4883_s8, 512 }
  0x9c   :  { %v129_v32 = vpack.c.bf16 %v117_v30, %v117_v30  ;;  %v5747_v33 = vld [vmem:[#allocation5 + $0x2c8] ss:$16 sps:$4 sm:$0xff]   ;;  %v5768_v48 = vld [vmem:[#allocation5 + $0x340] ss:$16 sps:$4 sm:$0xff]   ;;  %v5800_v2 = vld [vmem:[#allocation5 + $0x3e4] ss:$16 sps:$4 sm:$0xff]   ;;  %p6727_p0 = scmp.ne.s32.totalorder %s4883_s8, %s6726_s9  ;;  %p6732_p2 = scmp.lt.s32.totalorder %s6726_s9, %s6726_s9 }
  0x9d   :  { %v5836_v30 = vld [vmem:[#allocation5 + $0x4a4] ss:$16 sps:$4 sm:$0xff]  }
  0x9e   :  { %2481 = vmatpush1.bf16.msra.mxu0 %v5664_v34  ;;  %2727 = vmatpush1.bf16.msra.mxu1 %v5665_v35  ;;  %v5752_v34 = vld [vmem:[#allocation5 + $0x2e4] ss:$16 sps:$4 sm:$0xff]   ;;  %v5755_v35 = vld [vmem:[#allocation5 + $0x2ec] ss:$16 sps:$4 sm:$0xff]   ;;  %p6733_p3 = por %p6732_p2, %p6731_p1 }
  0x9f   :  { %2482 = vmatprep.subr.bf16.mxu0 %v5666_v36  ;;  %2728 = vmatprep.subr.bf16.mxu1 %v5668_v37  ;;  %v5750_v36 = vld [vmem:[#allocation5 + $0x2e0] ss:$16 sps:$4 sm:$0xff]   ;;  %v5753_v37 = vld [vmem:[#allocation5 + $0x2e8] ss:$16 sps:$4 sm:$0xff]  }
  0xa0   :  { %p6734_p4 = pnand %p6733_p3, %p6727_p0 }
  0xa2   :  { %2483 = vmatpush1.bf16.msra.mxu0 %v5670_v38  ;;  %2729 = vmatpush1.bf16.msra.mxu1 %v5671_v39  ;;  %v5758_v38 = vld [vmem:[#allocation5 + $0x304] ss:$16 sps:$4 sm:$0xff]   ;;  %v5761_v39 = vld [vmem:[#allocation5 + $0x30c] ss:$16 sps:$4 sm:$0xff]  }
  0xa3   :  { %2484 = vmatprep.subr.bf16.mxu0 %v5672_v40  ;;  %2730 = vmatprep.subr.bf16.mxu1 %v5674_v41  ;;  %v5756_v40 = vld [vmem:[#allocation5 + $0x300] ss:$16 sps:$4 sm:$0xff]   ;;  %v5759_v41 = vld [vmem:[#allocation5 + $0x308] ss:$16 sps:$4 sm:$0xff]  }
  0xa6   :  { %2485 = vmatpush1.bf16.msra.mxu0 %v5676_v42  ;;  %2731 = vmatpush1.bf16.msra.mxu1 %v5677_v43  ;;  %v5764_v42 = vld [vmem:[#allocation5 + $0x324] ss:$16 sps:$4 sm:$0xff]   ;;  %v5767_v43 = vld [vmem:[#allocation5 + $0x32c] ss:$16 sps:$4 sm:$0xff]  }
  0xa7   :  { %2486 = vmatprep.subr.bf16.mxu0 %v5678_v44  ;;  %2732 = vmatprep.subr.bf16.mxu1 %v5680_v45  ;;  %v5762_v44 = vld [vmem:[#allocation5 + $0x320] ss:$16 sps:$4 sm:$0xff]   ;;  %v5765_v45 = vld [vmem:[#allocation5 + $0x328] ss:$16 sps:$4 sm:$0xff]  }
  0xaa   :  { %2487 = vmatpush1.bf16.msra.mxu0 %v5682_v47  ;;  %2733 = vmatpush1.bf16.msra.mxu1 %v5683_v49  ;;  %v5773_v47 = vld [vmem:[#allocation5 + $0x34c] ss:$16 sps:$4 sm:$0xff]   ;;  %v5771_v49 = vld [vmem:[#allocation5 + $0x348] ss:$16 sps:$4 sm:$0xff]  }
  0xab   :  { %2488 = vmatprep.subr.bf16.mxu0 %v5684_v50  ;;  %2734 = vmatprep.subr.bf16.mxu1 %v5686_v51  ;;  %v5776_v50 = vld [vmem:[#allocation5 + $0x364] ss:$16 sps:$4 sm:$0xff]   ;;  %v5779_v51 = vld [vmem:[#allocation5 + $0x36c] ss:$16 sps:$4 sm:$0xff]  }
  0xae   :  { %2489 = vmatpush1.bf16.msra.mxu0 %v5688_v52  ;;  %2735 = vmatpush1.bf16.msra.mxu1 %v5689_v53  ;;  %v5774_v52 = vld [vmem:[#allocation5 + $0x360] ss:$16 sps:$4 sm:$0xff]   ;;  %v5777_v53 = vld [vmem:[#allocation5 + $0x368] ss:$16 sps:$4 sm:$0xff]  }
  0xaf   :  { %2490 = vmatprep.subr.bf16.mxu0 %v5690_v54  ;;  %2736 = vmatprep.subr.bf16.mxu1 %v5692_v55  ;;  %v5782_v54 = vld [vmem:[#allocation5 + $0x384] ss:$16 sps:$4 sm:$0xff]   ;;  %v5785_v55 = vld [vmem:[#allocation5 + $0x38c] ss:$16 sps:$4 sm:$0xff]  }
  0xb2   :  { %2491 = vmatpush1.bf16.msra.mxu0 %v5694_v56  ;;  %2737 = vmatpush1.bf16.msra.mxu1 %v5695_v57  ;;  %v5780_v56 = vld [vmem:[#allocation5 + $0x380] ss:$16 sps:$4 sm:$0xff]   ;;  %v5783_v57 = vld [vmem:[#allocation5 + $0x388] ss:$16 sps:$4 sm:$0xff]  }
  0xb3   :  { %2492 = vmatprep.subr.bf16.mxu0 %v5696_v58  ;;  %2738 = vmatprep.subr.bf16.mxu1 %v5698_v59  ;;  %v5788_v58 = vld [vmem:[#allocation5 + $0x3a4] ss:$16 sps:$4 sm:$0xff]   ;;  %v5791_v59 = vld [vmem:[#allocation5 + $0x3ac] ss:$16 sps:$4 sm:$0xff]  }
  0xb6   :  { %2493 = vmatpush1.bf16.msra.mxu0 %v5700_v60  ;;  %2739 = vmatpush1.bf16.msra.mxu1 %v5701_v61  ;;  %v5786_v60 = vld [vmem:[#allocation5 + $0x3a0] ss:$16 sps:$4 sm:$0xff]   ;;  %v5789_v61 = vld [vmem:[#allocation5 + $0x3a8] ss:$16 sps:$4 sm:$0xff]  }
  0xb7   :  { %2494 = vmatprep.subr.bf16.mxu0 %v5702_v62  ;;  %2740 = vmatprep.subr.bf16.mxu1 %v5704_v63  ;;  %v5794_v62 = vld [vmem:[#allocation5 + $0x3c4] ss:$16 sps:$4 sm:$0xff]   ;;  %v5797_v63 = vld [vmem:[#allocation5 + $0x3cc] ss:$16 sps:$4 sm:$0xff]  }
  0xba   :  { %2495 = vmatpush1.bf16.msra.mxu0 %v5706_v0  ;;  %2741 = vmatpush1.bf16.msra.mxu1 %v5707_v1  ;;  %v5792_v0 = vld [vmem:[#allocation5 + $0x3c0] ss:$16 sps:$4 sm:$0xff]   ;;  %v5795_v1 = vld [vmem:[#allocation5 + $0x3c8] ss:$16 sps:$4 sm:$0xff]  }
  0xbb   :  { %2505 = vmatprep.subr.bf16.mxu0 %v5710_v3  ;;  %2751 = vmatprep.subr.bf16.mxu1 %v5713_v4  ;;  %v5803_v3 = vld [vmem:[#allocation5 + $0x3ec] ss:$16 sps:$4 sm:$0xff]   ;;  %v5798_v4 = vld [vmem:[#allocation5 + $0x3e0] ss:$16 sps:$4 sm:$0xff]  }
  0xbd   :  { %2497 = vmatmul.mubr.bf16.vlgmr.msra.gmra.mrb[0].mxu0 %v126_v5  ;;  %2743 = vmatmul.mubr.bf16.vlgmr.msra.gmra.mrb[0].mxu1 %v126_v5  ;;  %v5801_v5 = vld [vmem:[#allocation5 + $0x3e8] ss:$16 sps:$4 sm:$0xff]  }
  0xbe   :  { %2506 = vmatpush1.bf16.msra.mxu0 %v5708_v6  ;;  %2752 = vmatpush1.bf16.msra.mxu1 %v5711_v7  ;;  %v5806_v6 = vld [vmem:[#allocation5 + $0x404] ss:$16 sps:$4 sm:$0xff]  }
  0xbf   :  { %2507 = vmatprep.subr.bf16.mxu0 %v5716_v8  ;;  %2753 = vmatprep.subr.bf16.mxu1 %v5719_v9  ;;  %v116_v7 = vld [vmem:[#allocation2 + $0x10] sm:$0xff]  ;;  %v5809_v8 = vld [vmem:[#allocation5 + $0x40c] ss:$16 sps:$4 sm:$0xff]  }
  0xc0   :  { %2537 = vmatprep.mubr.bf16.mxu0 %v129_v32  ;;  %2783 = vmatprep.mubr.bf16.mxu1 %v129_v32  ;;  %v5804_v9 = vld [vmem:[#allocation5 + $0x400] ss:$16 sps:$4 sm:$0xff]  }
  0xc1   :  { %v5834_v32 = vld [vmem:[#allocation5 + $0x4a0] ss:$16 sps:$4 sm:$0xff]  }
  0xc2   :  { %2508 = vmatpush1.bf16.msra.mxu0 %v5714_v10  ;;  %2754 = vmatpush1.bf16.msra.mxu1 %v5717_v11  ;;  %v5807_v10 = vld [vmem:[#allocation5 + $0x408] ss:$16 sps:$4 sm:$0xff]   ;;  %v128_v11 = vpack.c.bf16 %v116_v7, %v116_v7  ;;  %v5899_v7 = vld [vmem:[#allocation5 + $0x5ec] ss:$16 sps:$4 sm:$0xff]  }
  0xc3   :  { %2509 = vmatprep.subr.bf16.mxu0 %v5722_v12  ;;  %2755 = vmatprep.subr.bf16.mxu1 %v5725_v13  ;;  %v5812_v12 = vld [vmem:[#allocation5 + $0x424] ss:$16 sps:$4 sm:$0xff]   ;;  %v5815_v13 = vld [vmem:[#allocation5 + $0x42c] ss:$16 sps:$4 sm:$0xff]  }
  0xc6   :  { %2510 = vmatpush1.bf16.msra.mxu0 %v5720_v14  ;;  %2756 = vmatpush1.bf16.msra.mxu1 %v5723_v15  ;;  %v119_v14 = vld [vmem:[#allocation2 + $0x28] sm:$0xff] }
  0xc7   :  { %2511 = vmatprep.subr.bf16.mxu0 %v5728_v16  ;;  %2757 = vmatprep.subr.bf16.mxu1 %v5731_v17  ;;  %v131_v15 = vpack.c.bf16 %v119_v14, %v119_v14  ;;  %v5810_v16 = vld [vmem:[#allocation5 + $0x420] ss:$16 sps:$4 sm:$0xff]   ;;  %v5813_v17 = vld [vmem:[#allocation5 + $0x428] ss:$16 sps:$4 sm:$0xff]  }
  0xc8   :  { %v5903_v14 = vld [vmem:[#allocation5 + $0x608] ss:$16 sps:$4 sm:$0xff]  }
  0xca   :  { %2512 = vmatpush1.bf16.msra.mxu0 %v5726_v18  ;;  %2758 = vmatpush1.bf16.msra.mxu1 %v5729_v19  ;;  %v5818_v18 = vld [vmem:[#allocation5 + $0x444] ss:$16 sps:$4 sm:$0xff]   ;;  %v5821_v19 = vld [vmem:[#allocation5 + $0x44c] ss:$16 sps:$4 sm:$0xff]  }
  0xcb   :  { %2513 = vmatprep.subr.bf16.mxu0 %v5734_v20  ;;  %2759 = vmatprep.subr.bf16.mxu1 %v5737_v21  ;;  %v5816_v20 = vld [vmem:[#allocation5 + $0x440] ss:$16 sps:$4 sm:$0xff]   ;;  %v5819_v21 = vld [vmem:[#allocation5 + $0x448] ss:$16 sps:$4 sm:$0xff]  }
  0xce   :  { %2514 = vmatpush1.bf16.msra.mxu0 %v5732_v22  ;;  %2760 = vmatpush1.bf16.msra.mxu1 %v5735_v23  ;;  %v5824_v22 = vld [vmem:[#allocation5 + $0x464] ss:$16 sps:$4 sm:$0xff]   ;;  %v5827_v23 = vld [vmem:[#allocation5 + $0x46c] ss:$16 sps:$4 sm:$0xff]  }
  0xcf   :  { %2515 = vmatprep.subr.bf16.mxu0 %v5740_v24  ;;  %2761 = vmatprep.subr.bf16.mxu1 %v5743_v25  ;;  %v5822_v24 = vld [vmem:[#allocation5 + $0x460] ss:$16 sps:$4 sm:$0xff]   ;;  %v5825_v25 = vld [vmem:[#allocation5 + $0x468] ss:$16 sps:$4 sm:$0xff]  }
  0xd2   :  { %2516 = vmatpush1.bf16.msra.mxu0 %v5738_v26  ;;  %2762 = vmatpush1.bf16.msra.mxu1 %v5741_v27  ;;  %v5830_v26 = vld [vmem:[#allocation5 + $0x484] ss:$16 sps:$4 sm:$0xff]   ;;  %v5833_v27 = vld [vmem:[#allocation5 + $0x48c] ss:$16 sps:$4 sm:$0xff]  }
  0xd3   :  { %2517 = vmatprep.subr.bf16.mxu0 %v5746_v28  ;;  %2763 = vmatprep.subr.bf16.mxu1 %v5749_v29  ;;  %v5828_v28 = vld [vmem:[#allocation5 + $0x480] ss:$16 sps:$4 sm:$0xff]   ;;  %v5831_v29 = vld [vmem:[#allocation5 + $0x488] ss:$16 sps:$4 sm:$0xff]  }
  0xd6   :  { %2518 = vmatpush1.bf16.msra.mxu0 %v5744_v31  ;;  %2764 = vmatpush1.bf16.msra.mxu1 %v5747_v33  ;;  %v5839_v31 = vld [vmem:[#allocation5 + $0x4ac] ss:$16 sps:$4 sm:$0xff]   ;;  %v5837_v33 = vld [vmem:[#allocation5 + $0x4a8] ss:$16 sps:$4 sm:$0xff]  }
  0xd7   :  { %2519 = vmatprep.subr.bf16.mxu0 %v5752_v34  ;;  %2765 = vmatprep.subr.bf16.mxu1 %v5755_v35  ;;  %v5842_v34 = vld [vmem:[#allocation5 + $0x4c4] ss:$16 sps:$4 sm:$0xff]   ;;  %v5845_v35 = vld [vmem:[#allocation5 + $0x4cc] ss:$16 sps:$4 sm:$0xff]  }
  0xda   :  { %2520 = vmatpush1.bf16.msra.mxu0 %v5750_v36  ;;  %2766 = vmatpush1.bf16.msra.mxu1 %v5753_v37  ;;  %v5840_v36 = vld [vmem:[#allocation5 + $0x4c0] ss:$16 sps:$4 sm:$0xff]   ;;  %v5843_v37 = vld [vmem:[#allocation5 + $0x4c8] ss:$16 sps:$4 sm:$0xff]  }
  0xdb   :  { %2521 = vmatprep.subr.bf16.mxu0 %v5758_v38  ;;  %2767 = vmatprep.subr.bf16.mxu1 %v5761_v39  ;;  %v5848_v38 = vld [vmem:[#allocation5 + $0x4e4] ss:$16 sps:$4 sm:$0xff]   ;;  %v5851_v39 = vld [vmem:[#allocation5 + $0x4ec] ss:$16 sps:$4 sm:$0xff]  }
  0xde   :  { %2522 = vmatpush1.bf16.msra.mxu0 %v5756_v40  ;;  %2768 = vmatpush1.bf16.msra.mxu1 %v5759_v41  ;;  %v5846_v40 = vld [vmem:[#allocation5 + $0x4e0] ss:$16 sps:$4 sm:$0xff]   ;;  %v5849_v41 = vld [vmem:[#allocation5 + $0x4e8] ss:$16 sps:$4 sm:$0xff]  }
  0xdf   :  { %2523 = vmatprep.subr.bf16.mxu0 %v5764_v42  ;;  %2769 = vmatprep.subr.bf16.mxu1 %v5767_v43  ;;  %v5854_v42 = vld [vmem:[#allocation5 + $0x504] ss:$16 sps:$4 sm:$0xff]   ;;  %v5857_v43 = vld [vmem:[#allocation5 + $0x50c] ss:$16 sps:$4 sm:$0xff]  }
  0xe2   :  { %2524 = vmatpush1.bf16.msra.mxu0 %v5762_v44  ;;  %2770 = vmatpush1.bf16.msra.mxu1 %v5765_v45  ;;  %v5852_v44 = vld [vmem:[#allocation5 + $0x500] ss:$16 sps:$4 sm:$0xff]   ;;  %v5855_v45 = vld [vmem:[#allocation5 + $0x508] ss:$16 sps:$4 sm:$0xff]  }
  0xe3   :  { %2525 = vmatprep.subr.bf16.mxu0 %v5770_v46  ;;  %2771 = vmatprep.subr.bf16.mxu1 %v5773_v47  ;;  %v5860_v46 = vld [vmem:[#allocation5 + $0x524] ss:$16 sps:$4 sm:$0xff]   ;;  %v5863_v47 = vld [vmem:[#allocation5 + $0x52c] ss:$16 sps:$4 sm:$0xff]  }
  0xe6   :  { %2526 = vmatpush1.bf16.msra.mxu0 %v5768_v48  ;;  %2772 = vmatpush1.bf16.msra.mxu1 %v5771_v49  ;;  %v5858_v48 = vld [vmem:[#allocation5 + $0x520] ss:$16 sps:$4 sm:$0xff]   ;;  %v5861_v49 = vld [vmem:[#allocation5 + $0x528] ss:$16 sps:$4 sm:$0xff]  }
  0xe7   :  { %2527 = vmatprep.subr.bf16.mxu0 %v5776_v50  ;;  %2773 = vmatprep.subr.bf16.mxu1 %v5779_v51  ;;  %v5866_v50 = vld [vmem:[#allocation5 + $0x544] ss:$16 sps:$4 sm:$0xff]   ;;  %v5869_v51 = vld [vmem:[#allocation5 + $0x54c] ss:$16 sps:$4 sm:$0xff]  }
  0xea   :  { %2528 = vmatpush1.bf16.msra.mxu0 %v5774_v52  ;;  %2774 = vmatpush1.bf16.msra.mxu1 %v5777_v53  ;;  %v5864_v52 = vld [vmem:[#allocation5 + $0x540] ss:$16 sps:$4 sm:$0xff]   ;;  %v5867_v53 = vld [vmem:[#allocation5 + $0x548] ss:$16 sps:$4 sm:$0xff]  }
  0xeb   :  { %2529 = vmatprep.subr.bf16.mxu0 %v5782_v54  ;;  %2775 = vmatprep.subr.bf16.mxu1 %v5785_v55  ;;  %v5872_v54 = vld [vmem:[#allocation5 + $0x564] ss:$16 sps:$4 sm:$0xff]   ;;  %v5875_v55 = vld [vmem:[#allocation5 + $0x56c] ss:$16 sps:$4 sm:$0xff]  }
  0xee   :  { %2530 = vmatpush1.bf16.msra.mxu0 %v5780_v56  ;;  %2776 = vmatpush1.bf16.msra.mxu1 %v5783_v57  ;;  %v5870_v56 = vld [vmem:[#allocation5 + $0x560] ss:$16 sps:$4 sm:$0xff]   ;;  %v5873_v57 = vld [vmem:[#allocation5 + $0x568] ss:$16 sps:$4 sm:$0xff]  }
  0xef   :  { %2531 = vmatprep.subr.bf16.mxu0 %v5788_v58  ;;  %2777 = vmatprep.subr.bf16.mxu1 %v5791_v59  ;;  %v5878_v58 = vld [vmem:[#allocation5 + $0x584] ss:$16 sps:$4 sm:$0xff]   ;;  %v5881_v59 = vld [vmem:[#allocation5 + $0x58c] ss:$16 sps:$4 sm:$0xff]  }
  0xf2   :  { %2532 = vmatpush1.bf16.msra.mxu0 %v5786_v60  ;;  %2778 = vmatpush1.bf16.msra.mxu1 %v5789_v61  ;;  %v5876_v60 = vld [vmem:[#allocation5 + $0x580] ss:$16 sps:$4 sm:$0xff]   ;;  %v5879_v61 = vld [vmem:[#allocation5 + $0x588] ss:$16 sps:$4 sm:$0xff]  }
  0xf3   :  { %2533 = vmatprep.subr.bf16.mxu0 %v5794_v62  ;;  %2779 = vmatprep.subr.bf16.mxu1 %v5797_v63  ;;  %v5884_v62 = vld [vmem:[#allocation5 + $0x5a4] ss:$16 sps:$4 sm:$0xff]   ;;  %v5887_v63 = vld [vmem:[#allocation5 + $0x5ac] ss:$16 sps:$4 sm:$0xff]  }
  0xf6   :  { %2534 = vmatpush1.bf16.msra.mxu0 %v5792_v0  ;;  %2780 = vmatpush1.bf16.msra.mxu1 %v5795_v1  ;;  %v5882_v0 = vld [vmem:[#allocation5 + $0x5a0] ss:$16 sps:$4 sm:$0xff]   ;;  %v5885_v1 = vld [vmem:[#allocation5 + $0x5a8] ss:$16 sps:$4 sm:$0xff]  }
  0xf7   :  { %2535 = vmatprep.subr.bf16.mxu0 %v5800_v2  ;;  %2781 = vmatprep.subr.bf16.mxu1 %v5803_v3  ;;  %v5890_v2 = vld [vmem:[#allocation5 + $0x5c4] ss:$16 sps:$4 sm:$0xff]   ;;  %v5893_v3 = vld [vmem:[#allocation5 + $0x5cc] ss:$16 sps:$4 sm:$0xff]  }
  0xfa   :  { %2536 = vmatpush1.bf16.msra.mxu0 %v5798_v4  ;;  %2782 = vmatpush1.bf16.msra.mxu1 %v5801_v5  ;;  %v5888_v4 = vld [vmem:[#allocation5 + $0x5c0] ss:$16 sps:$4 sm:$0xff]   ;;  %v5891_v5 = vld [vmem:[#allocation5 + $0x5c8] ss:$16 sps:$4 sm:$0xff]  }
  0xfb   :  { %2546 = vmatprep.subr.bf16.mxu0 %v5806_v6  ;;  %2792 = vmatprep.subr.bf16.mxu1 %v5809_v8  ;;  %v5896_v6 = vld [vmem:[#allocation5 + $0x5e4] ss:$16 sps:$4 sm:$0xff]   ;;  %v5894_v8 = vld [vmem:[#allocation5 + $0x5e0] ss:$16 sps:$4 sm:$0xff]  }
  0xfd   :  { %2538 = vmatmul.mubr.bf16.vlgmr.msra.gmra.mrb[0].mxu0 %v128_v11  ;;  %2784 = vmatmul.mubr.bf16.vlgmr.msra.gmra.mrb[0].mxu1 %v128_v11  ;;  %v118_v11 = vld [vmem:[#allocation2 + $0x20] sm:$0xff] }
  0xfe   :  { %2547 = vmatpush1.bf16.msra.mxu0 %v5804_v9  ;;  %2793 = vmatpush1.bf16.msra.mxu1 %v5807_v10  ;;  %v5897_v9 = vld [vmem:[#allocation5 + $0x5e8] ss:$16 sps:$4 sm:$0xff]   ;;  %v5902_v10 = vld [vmem:[#allocation5 + $0x604] ss:$16 sps:$4 sm:$0xff]  }
  0xff   :  { %2548 = vmatprep.subr.bf16.mxu0 %v5812_v12  ;;  %2794 = vmatprep.subr.bf16.mxu1 %v5815_v13  ;;  %v5905_v12 = vld [vmem:[#allocation5 + $0x60c] ss:$16 sps:$4 sm:$0xff]   ;;  %v5900_v13 = vld [vmem:[#allocation5 + $0x600] ss:$16 sps:$4 sm:$0xff]  }
 0x100   :  { %2578 = vmatprep.mubr.bf16.mxu0 %v131_v15  ;;  %2824 = vmatprep.mubr.bf16.mxu1 %v131_v15  ;;  %v130_v15 = vpack.c.bf16 %v118_v11, %v118_v11  ;;  %v5995_v11 = vld [vmem:[#allocation5 + $0x7ec] ss:$16 sps:$4 sm:$0xff]  }
 0x102   :  { %2549 = vmatpush1.bf16.msra.mxu0 %v5810_v16  ;;  %2795 = vmatpush1.bf16.msra.mxu1 %v5813_v17  ;;  %v121_v16 = vld [vmem:[#allocation2 + $0x38] sm:$0xff]  ;;  %v5908_v17 = vld [vmem:[#allocation5 + $0x624] ss:$16 sps:$4 sm:$0xff]  }
 0x103   :  { %2550 = vmatprep.subr.bf16.mxu0 %v5818_v18  ;;  %2796 = vmatprep.subr.bf16.mxu1 %v5821_v19  ;;  %v5911_v18 = vld [vmem:[#allocation5 + $0x62c] ss:$16 sps:$4 sm:$0xff]   ;;  %v133_v19 = vpack.c.bf16 %v121_v16, %v121_v16 }
 0x104   :  { %v6001_v16 = vld [vmem:[#allocation5 + $0x80c] ss:$16 sps:$4 sm:$0xff]  }
 0x106   :  { %2551 = vmatpush1.bf16.msra.mxu0 %v5816_v20  ;;  %2797 = vmatpush1.bf16.msra.mxu1 %v5819_v21  ;;  %v5906_v20 = vld [vmem:[#allocation5 + $0x620] ss:$16 sps:$4 sm:$0xff]   ;;  %v5909_v21 = vld [vmem:[#allocation5 + $0x628] ss:$16 sps:$4 sm:$0xff]  }
 0x107   :  { %2552 = vmatprep.subr.bf16.mxu0 %v5824_v22  ;;  %2798 = vmatprep.subr.bf16.mxu1 %v5827_v23  ;;  %v5914_v22 = vld [vmem:[#allocation5 + $0x644] ss:$16 sps:$4 sm:$0xff]   ;;  %v5917_v23 = vld [vmem:[#allocation5 + $0x64c] ss:$16 sps:$4 sm:$0xff]  }
 0x10a   :  { %2553 = vmatpush1.bf16.msra.mxu0 %v5822_v24  ;;  %2799 = vmatpush1.bf16.msra.mxu1 %v5825_v25  ;;  %v5912_v24 = vld [vmem:[#allocation5 + $0x640] ss:$16 sps:$4 sm:$0xff]   ;;  %v5915_v25 = vld [vmem:[#allocation5 + $0x648] ss:$16 sps:$4 sm:$0xff]  }
 0x10b   :  { %2554 = vmatprep.subr.bf16.mxu0 %v5830_v26  ;;  %2800 = vmatprep.subr.bf16.mxu1 %v5833_v27  ;;  %v5920_v26 = vld [vmem:[#allocation5 + $0x664] ss:$16 sps:$4 sm:$0xff]   ;;  %v5923_v27 = vld [vmem:[#allocation5 + $0x66c] ss:$16 sps:$4 sm:$0xff]  }
 0x10e   :  { %2555 = vmatpush1.bf16.msra.mxu0 %v5828_v28  ;;  %2801 = vmatpush1.bf16.msra.mxu1 %v5831_v29  ;;  %v5918_v28 = vld [vmem:[#allocation5 + $0x660] ss:$16 sps:$4 sm:$0xff]   ;;  %v5921_v29 = vld [vmem:[#allocation5 + $0x668] ss:$16 sps:$4 sm:$0xff]  }
 0x10f   :  { %2556 = vmatprep.subr.bf16.mxu0 %v5836_v30  ;;  %2802 = vmatprep.subr.bf16.mxu1 %v5839_v31  ;;  %v5926_v30 = vld [vmem:[#allocation5 + $0x684] ss:$16 sps:$4 sm:$0xff]   ;;  %v5929_v31 = vld [vmem:[#allocation5 + $0x68c] ss:$16 sps:$4 sm:$0xff]  }
 0x112   :  { %2557 = vmatpush1.bf16.msra.mxu0 %v5834_v32  ;;  %2803 = vmatpush1.bf16.msra.mxu1 %v5837_v33  ;;  %v5924_v32 = vld [vmem:[#allocation5 + $0x680] ss:$16 sps:$4 sm:$0xff]   ;;  %v5927_v33 = vld [vmem:[#allocation5 + $0x688] ss:$16 sps:$4 sm:$0xff]  }
 0x113   :  { %2558 = vmatprep.subr.bf16.mxu0 %v5842_v34  ;;  %2804 = vmatprep.subr.bf16.mxu1 %v5845_v35  ;;  %v5932_v34 = vld [vmem:[#allocation5 + $0x6a4] ss:$16 sps:$4 sm:$0xff]   ;;  %v5935_v35 = vld [vmem:[#allocation5 + $0x6ac] ss:$16 sps:$4 sm:$0xff]  }
 0x116   :  { %2559 = vmatpush1.bf16.msra.mxu0 %v5840_v36  ;;  %2805 = vmatpush1.bf16.msra.mxu1 %v5843_v37  ;;  %v5930_v36 = vld [vmem:[#allocation5 + $0x6a0] ss:$16 sps:$4 sm:$0xff]   ;;  %v5933_v37 = vld [vmem:[#allocation5 + $0x6a8] ss:$16 sps:$4 sm:$0xff]  }
 0x117   :  { %2560 = vmatprep.subr.bf16.mxu0 %v5848_v38  ;;  %2806 = vmatprep.subr.bf16.mxu1 %v5851_v39  ;;  %v5938_v38 = vld [vmem:[#allocation5 + $0x6c4] ss:$16 sps:$4 sm:$0xff]   ;;  %v5941_v39 = vld [vmem:[#allocation5 + $0x6cc] ss:$16 sps:$4 sm:$0xff]  }
 0x11a   :  { %2561 = vmatpush1.bf16.msra.mxu0 %v5846_v40  ;;  %2807 = vmatpush1.bf16.msra.mxu1 %v5849_v41  ;;  %v5936_v40 = vld [vmem:[#allocation5 + $0x6c0] ss:$16 sps:$4 sm:$0xff]   ;;  %v5939_v41 = vld [vmem:[#allocation5 + $0x6c8] ss:$16 sps:$4 sm:$0xff]  }
 0x11b   :  { %2562 = vmatprep.subr.bf16.mxu0 %v5854_v42  ;;  %2808 = vmatprep.subr.bf16.mxu1 %v5857_v43  ;;  %v5944_v42 = vld [vmem:[#allocation5 + $0x6e4] ss:$16 sps:$4 sm:$0xff]   ;;  %v5947_v43 = vld [vmem:[#allocation5 + $0x6ec] ss:$16 sps:$4 sm:$0xff]  }
 0x11e   :  { %2563 = vmatpush1.bf16.msra.mxu0 %v5852_v44  ;;  %2809 = vmatpush1.bf16.msra.mxu1 %v5855_v45  ;;  %v5942_v44 = vld [vmem:[#allocation5 + $0x6e0] ss:$16 sps:$4 sm:$0xff]   ;;  %v5945_v45 = vld [vmem:[#allocation5 + $0x6e8] ss:$16 sps:$4 sm:$0xff]  }
 0x11f   :  { %2564 = vmatprep.subr.bf16.mxu0 %v5860_v46  ;;  %2810 = vmatprep.subr.bf16.mxu1 %v5863_v47  ;;  %v5950_v46 = vld [vmem:[#allocation5 + $0x704] ss:$16 sps:$4 sm:$0xff]   ;;  %v5953_v47 = vld [vmem:[#allocation5 + $0x70c] ss:$16 sps:$4 sm:$0xff]  }
 0x122   :  { %2565 = vmatpush1.bf16.msra.mxu0 %v5858_v48  ;;  %2811 = vmatpush1.bf16.msra.mxu1 %v5861_v49  ;;  %v5948_v48 = vld [vmem:[#allocation5 + $0x700] ss:$16 sps:$4 sm:$0xff]   ;;  %v5951_v49 = vld [vmem:[#allocation5 + $0x708] ss:$16 sps:$4 sm:$0xff]  }
 0x123   :  { %2566 = vmatprep.subr.bf16.mxu0 %v5866_v50  ;;  %2812 = vmatprep.subr.bf16.mxu1 %v5869_v51  ;;  %v5956_v50 = vld [vmem:[#allocation5 + $0x724] ss:$16 sps:$4 sm:$0xff]   ;;  %v5959_v51 = vld [vmem:[#allocation5 + $0x72c] ss:$16 sps:$4 sm:$0xff]  }
 0x126   :  { %2567 = vmatpush1.bf16.msra.mxu0 %v5864_v52  ;;  %2813 = vmatpush1.bf16.msra.mxu1 %v5867_v53  ;;  %v5954_v52 = vld [vmem:[#allocation5 + $0x720] ss:$16 sps:$4 sm:$0xff]   ;;  %v5957_v53 = vld [vmem:[#allocation5 + $0x728] ss:$16 sps:$4 sm:$0xff]  }
 0x127   :  { %2568 = vmatprep.subr.bf16.mxu0 %v5872_v54  ;;  %2814 = vmatprep.subr.bf16.mxu1 %v5875_v55  ;;  %v5962_v54 = vld [vmem:[#allocation5 + $0x744] ss:$16 sps:$4 sm:$0xff]   ;;  %v5965_v55 = vld [vmem:[#allocation5 + $0x74c] ss:$16 sps:$4 sm:$0xff]  }
 0x12a   :  { %2569 = vmatpush1.bf16.msra.mxu0 %v5870_v56  ;;  %2815 = vmatpush1.bf16.msra.mxu1 %v5873_v57  ;;  %v5960_v56 = vld [vmem:[#allocation5 + $0x740] ss:$16 sps:$4 sm:$0xff]   ;;  %v5963_v57 = vld [vmem:[#allocation5 + $0x748] ss:$16 sps:$4 sm:$0xff]  }
 0x12b   :  { %2570 = vmatprep.subr.bf16.mxu0 %v5878_v58  ;;  %2816 = vmatprep.subr.bf16.mxu1 %v5881_v59  ;;  %v5968_v58 = vld [vmem:[#allocation5 + $0x764] ss:$16 sps:$4 sm:$0xff]   ;;  %v5971_v59 = vld [vmem:[#allocation5 + $0x76c] ss:$16 sps:$4 sm:$0xff]  }
 0x12e   :  { %2571 = vmatpush1.bf16.msra.mxu0 %v5876_v60  ;;  %2817 = vmatpush1.bf16.msra.mxu1 %v5879_v61  ;;  %v5966_v60 = vld [vmem:[#allocation5 + $0x760] ss:$16 sps:$4 sm:$0xff]   ;;  %v5969_v61 = vld [vmem:[#allocation5 + $0x768] ss:$16 sps:$4 sm:$0xff]  }
 0x12f   :  { %2572 = vmatprep.subr.bf16.mxu0 %v5884_v62  ;;  %2818 = vmatprep.subr.bf16.mxu1 %v5887_v63  ;;  %v5974_v62 = vld [vmem:[#allocation5 + $0x784] ss:$16 sps:$4 sm:$0xff]   ;;  %v5977_v63 = vld [vmem:[#allocation5 + $0x78c] ss:$16 sps:$4 sm:$0xff]  }
 0x132   :  { %2573 = vmatpush1.bf16.msra.mxu0 %v5882_v0  ;;  %2819 = vmatpush1.bf16.msra.mxu1 %v5885_v1  ;;  %v5972_v0 = vld [vmem:[#allocation5 + $0x780] ss:$16 sps:$4 sm:$0xff]   ;;  %v5975_v1 = vld [vmem:[#allocation5 + $0x788] ss:$16 sps:$4 sm:$0xff]  }
 0x133   :  { %2574 = vmatprep.subr.bf16.mxu0 %v5890_v2  ;;  %2820 = vmatprep.subr.bf16.mxu1 %v5893_v3  ;;  %v5980_v2 = vld [vmem:[#allocation5 + $0x7a4] ss:$16 sps:$4 sm:$0xff]   ;;  %v5983_v3 = vld [vmem:[#allocation5 + $0x7ac] ss:$16 sps:$4 sm:$0xff]  }
 0x136   :  { %2575 = vmatpush1.bf16.msra.mxu0 %v5888_v4  ;;  %2821 = vmatpush1.bf16.msra.mxu1 %v5891_v5  ;;  %v5978_v4 = vld [vmem:[#allocation5 + $0x7a0] ss:$16 sps:$4 sm:$0xff]   ;;  %v5981_v5 = vld [vmem:[#allocation5 + $0x7a8] ss:$16 sps:$4 sm:$0xff]  }
 0x137   :  { %2576 = vmatprep.subr.bf16.mxu0 %v5896_v6  ;;  %2822 = vmatprep.subr.bf16.mxu1 %v5899_v7  ;;  %v5986_v6 = vld [vmem:[#allocation5 + $0x7c4] ss:$16 sps:$4 sm:$0xff]   ;;  %v5989_v7 = vld [vmem:[#allocation5 + $0x7cc] ss:$16 sps:$4 sm:$0xff]  }
 0x13a   :  { %2577 = vmatpush1.bf16.msra.mxu0 %v5894_v8  ;;  %2823 = vmatpush1.bf16.msra.mxu1 %v5897_v9  ;;  %v5984_v8 = vld [vmem:[#allocation5 + $0x7c0] ss:$16 sps:$4 sm:$0xff]   ;;  %v5987_v9 = vld [vmem:[#allocation5 + $0x7c8] ss:$16 sps:$4 sm:$0xff]  }
 0x13b   :  { %2587 = vmatprep.subr.bf16.mxu0 %v5902_v10  ;;  %2833 = vmatprep.subr.bf16.mxu1 %v5905_v12  ;;  %v5992_v10 = vld [vmem:[#allocation5 + $0x7e4] ss:$16 sps:$4 sm:$0xff]   ;;  %v5990_v12 = vld [vmem:[#allocation5 + $0x7e0] ss:$16 sps:$4 sm:$0xff]  }
 0x13d   :  { %2579 = vmatmul.mubr.bf16.vlgmr.msra.gmra.mrb[0].mxu0 %v130_v15  ;;  %2825 = vmatmul.mubr.bf16.vlgmr.msra.gmra.mrb[0].mxu1 %v130_v15  ;;  %v5998_v15 = vld [vmem:[#allocation5 + $0x804] ss:$16 sps:$4 sm:$0xff]  }
 0x13e   :  { %2588 = vmatpush1.bf16.msra.mxu0 %v5900_v13  ;;  %2834 = vmatpush1.bf16.msra.mxu1 %v5903_v14  ;;  %v5993_v13 = vld [vmem:[#allocation5 + $0x7e8] ss:$16 sps:$4 sm:$0xff]   ;;  %v120_v14 = vld [vmem:[#allocation2 + $0x30] sm:$0xff] }
 0x13f   :  { %2589 = vmatprep.subr.bf16.mxu0 %v5908_v17  ;;  %2835 = vmatprep.subr.bf16.mxu1 %v5911_v18  ;;  %v132_v17 = vpack.c.bf16 %v120_v14, %v120_v14  ;;  %v123_v18 = vld [vmem:[#allocation2 + $0x48] sm:$0xff]  ;;  %v6088_v14 = vld [vmem:[#allocation5 + $0x9e4] ss:$16 sps:$4 sm:$0xff]  }
 0x140   :  { %2619 = vmatprep.mubr.bf16.mxu0 %v133_v19  ;;  %2865 = vmatprep.mubr.bf16.mxu1 %v133_v19  ;;  %v5996_v19 = vld [vmem:[#allocation5 + $0x800] ss:$16 sps:$4 sm:$0xff]  }
 0x142   :  { %2590 = vmatpush1.bf16.msra.mxu0 %v5906_v20  ;;  %2836 = vmatpush1.bf16.msra.mxu1 %v5909_v21  ;;  %v5999_v20 = vld [vmem:[#allocation5 + $0x808] ss:$16 sps:$4 sm:$0xff]   ;;  %v6004_v21 = vld [vmem:[#allocation5 + $0x824] ss:$16 sps:$4 sm:$0xff]  }
 0x143   :  { %2591 = vmatprep.subr.bf16.mxu0 %v5914_v22  ;;  %2837 = vmatprep.subr.bf16.mxu1 %v5917_v23  ;;  %v6007_v22 = vld [vmem:[#allocation5 + $0x82c] ss:$16 sps:$4 sm:$0xff]   ;;  %v135_v23 = vpack.c.bf16 %v123_v18, %v123_v18  ;;  %v6094_v18 = vld [vmem:[#allocation5 + $0xa04] ss:$16 sps:$4 sm:$0xff]  }
 0x146   :  { %2592 = vmatpush1.bf16.msra.mxu0 %v5912_v24  ;;  %2838 = vmatpush1.bf16.msra.mxu1 %v5915_v25  ;;  %v6002_v24 = vld [vmem:[#allocation5 + $0x820] ss:$16 sps:$4 sm:$0xff]   ;;  %v6005_v25 = vld [vmem:[#allocation5 + $0x828] ss:$16 sps:$4 sm:$0xff]  }
 0x147   :  { %2593 = vmatprep.subr.bf16.mxu0 %v5920_v26  ;;  %2839 = vmatprep.subr.bf16.mxu1 %v5923_v27  ;;  %v6010_v26 = vld [vmem:[#allocation5 + $0x844] ss:$16 sps:$4 sm:$0xff]   ;;  %v6013_v27 = vld [vmem:[#allocation5 + $0x84c] ss:$16 sps:$4 sm:$0xff]  }
 0x14a   :  { %2594 = vmatpush1.bf16.msra.mxu0 %v5918_v28  ;;  %2840 = vmatpush1.bf16.msra.mxu1 %v5921_v29  ;;  %v6008_v28 = vld [vmem:[#allocation5 + $0x840] ss:$16 sps:$4 sm:$0xff]   ;;  %v6011_v29 = vld [vmem:[#allocation5 + $0x848] ss:$16 sps:$4 sm:$0xff]  }
 0x14b   :  { %2595 = vmatprep.subr.bf16.mxu0 %v5926_v30  ;;  %2841 = vmatprep.subr.bf16.mxu1 %v5929_v31  ;;  %v6016_v30 = vld [vmem:[#allocation5 + $0x864] ss:$16 sps:$4 sm:$0xff]   ;;  %v6019_v31 = vld [vmem:[#allocation5 + $0x86c] ss:$16 sps:$4 sm:$0xff]  }
 0x14e   :  { %2596 = vmatpush1.bf16.msra.mxu0 %v5924_v32  ;;  %2842 = vmatpush1.bf16.msra.mxu1 %v5927_v33  ;;  %v6014_v32 = vld [vmem:[#allocation5 + $0x860] ss:$16 sps:$4 sm:$0xff]   ;;  %v6017_v33 = vld [vmem:[#allocation5 + $0x868] ss:$16 sps:$4 sm:$0xff]  }
 0x14f   :  { %2597 = vmatprep.subr.bf16.mxu0 %v5932_v34  ;;  %2843 = vmatprep.subr.bf16.mxu1 %v5935_v35  ;;  %v6022_v34 = vld [vmem:[#allocation5 + $0x884] ss:$16 sps:$4 sm:$0xff]   ;;  %v6025_v35 = vld [vmem:[#allocation5 + $0x88c] ss:$16 sps:$4 sm:$0xff]  }
 0x152   :  { %2598 = vmatpush1.bf16.msra.mxu0 %v5930_v36  ;;  %2844 = vmatpush1.bf16.msra.mxu1 %v5933_v37  ;;  %v6020_v36 = vld [vmem:[#allocation5 + $0x880] ss:$16 sps:$4 sm:$0xff]   ;;  %v6023_v37 = vld [vmem:[#allocation5 + $0x888] ss:$16 sps:$4 sm:$0xff]  }
 0x153   :  { %2599 = vmatprep.subr.bf16.mxu0 %v5938_v38  ;;  %2845 = vmatprep.subr.bf16.mxu1 %v5941_v39  ;;  %v6028_v38 = vld [vmem:[#allocation5 + $0x8a4] ss:$16 sps:$4 sm:$0xff]   ;;  %v6031_v39 = vld [vmem:[#allocation5 + $0x8ac] ss:$16 sps:$4 sm:$0xff]  }
 0x156   :  { %2600 = vmatpush1.bf16.msra.mxu0 %v5936_v40  ;;  %2846 = vmatpush1.bf16.msra.mxu1 %v5939_v41  ;;  %v6026_v40 = vld [vmem:[#allocation5 + $0x8a0] ss:$16 sps:$4 sm:$0xff]   ;;  %v6029_v41 = vld [vmem:[#allocation5 + $0x8a8] ss:$16 sps:$4 sm:$0xff]  }
 0x157   :  { %2601 = vmatprep.subr.bf16.mxu0 %v5944_v42  ;;  %2847 = vmatprep.subr.bf16.mxu1 %v5947_v43  ;;  %v6034_v42 = vld [vmem:[#allocation5 + $0x8c4] ss:$16 sps:$4 sm:$0xff]   ;;  %v6037_v43 = vld [vmem:[#allocation5 + $0x8cc] ss:$16 sps:$4 sm:$0xff]  }
 0x15a   :  { %2602 = vmatpush1.bf16.msra.mxu0 %v5942_v44  ;;  %2848 = vmatpush1.bf16.msra.mxu1 %v5945_v45  ;;  %v6032_v44 = vld [vmem:[#allocation5 + $0x8c0] ss:$16 sps:$4 sm:$0xff]   ;;  %v6035_v45 = vld [vmem:[#allocation5 + $0x8c8] ss:$16 sps:$4 sm:$0xff]  }
 0x15b   :  { %2603 = vmatprep.subr.bf16.mxu0 %v5950_v46  ;;  %2849 = vmatprep.subr.bf16.mxu1 %v5953_v47  ;;  %v6040_v46 = vld [vmem:[#allocation5 + $0x8e4] ss:$16 sps:$4 sm:$0xff]   ;;  %v6043_v47 = vld [vmem:[#allocation5 + $0x8ec] ss:$16 sps:$4 sm:$0xff]  }
 0x15e   :  { %2604 = vmatpush1.bf16.msra.mxu0 %v5948_v48  ;;  %2850 = vmatpush1.bf16.msra.mxu1 %v5951_v49  ;;  %v6038_v48 = vld [vmem:[#allocation5 + $0x8e0] ss:$16 sps:$4 sm:$0xff]   ;;  %v6041_v49 = vld [vmem:[#allocation5 + $0x8e8] ss:$16 sps:$4 sm:$0xff]  }
 0x15f   :  { %2605 = vmatprep.subr.bf16.mxu0 %v5956_v50  ;;  %2851 = vmatprep.subr.bf16.mxu1 %v5959_v51  ;;  %v6046_v50 = vld [vmem:[#allocation5 + $0x904] ss:$16 sps:$4 sm:$0xff]   ;;  %v6049_v51 = vld [vmem:[#allocation5 + $0x90c] ss:$16 sps:$4 sm:$0xff]  }
 0x162   :  { %2606 = vmatpush1.bf16.msra.mxu0 %v5954_v52  ;;  %2852 = vmatpush1.bf16.msra.mxu1 %v5957_v53  ;;  %v6044_v52 = vld [vmem:[#allocation5 + $0x900] ss:$16 sps:$4 sm:$0xff]   ;;  %v6047_v53 = vld [vmem:[#allocation5 + $0x908] ss:$16 sps:$4 sm:$0xff]  }
 0x163   :  { %2607 = vmatprep.subr.bf16.mxu0 %v5962_v54  ;;  %2853 = vmatprep.subr.bf16.mxu1 %v5965_v55  ;;  %v6052_v54 = vld [vmem:[#allocation5 + $0x924] ss:$16 sps:$4 sm:$0xff]   ;;  %v6055_v55 = vld [vmem:[#allocation5 + $0x92c] ss:$16 sps:$4 sm:$0xff]  }
 0x166   :  { %2608 = vmatpush1.bf16.msra.mxu0 %v5960_v56  ;;  %2854 = vmatpush1.bf16.msra.mxu1 %v5963_v57  ;;  %v6050_v56 = vld [vmem:[#allocation5 + $0x920] ss:$16 sps:$4 sm:$0xff]   ;;  %v6053_v57 = vld [vmem:[#allocation5 + $0x928] ss:$16 sps:$4 sm:$0xff]  }
 0x167   :  { %2609 = vmatprep.subr.bf16.mxu0 %v5968_v58  ;;  %2855 = vmatprep.subr.bf16.mxu1 %v5971_v59  ;;  %v6058_v58 = vld [vmem:[#allocation5 + $0x944] ss:$16 sps:$4 sm:$0xff]   ;;  %v6061_v59 = vld [vmem:[#allocation5 + $0x94c] ss:$16 sps:$4 sm:$0xff]  }
 0x16a   :  { %2610 = vmatpush1.bf16.msra.mxu0 %v5966_v60  ;;  %2856 = vmatpush1.bf16.msra.mxu1 %v5969_v61  ;;  %v6056_v60 = vld [vmem:[#allocation5 + $0x940] ss:$16 sps:$4 sm:$0xff]   ;;  %v6059_v61 = vld [vmem:[#allocation5 + $0x948] ss:$16 sps:$4 sm:$0xff]  }
 0x16b   :  { %2611 = vmatprep.subr.bf16.mxu0 %v5974_v62  ;;  %2857 = vmatprep.subr.bf16.mxu1 %v5977_v63  ;;  %v6064_v62 = vld [vmem:[#allocation5 + $0x964] ss:$16 sps:$4 sm:$0xff]   ;;  %v6067_v63 = vld [vmem:[#allocation5 + $0x96c] ss:$16 sps:$4 sm:$0xff]  }
 0x16e   :  { %2612 = vmatpush1.bf16.msra.mxu0 %v5972_v0  ;;  %2858 = vmatpush1.bf16.msra.mxu1 %v5975_v1  ;;  %v6062_v0 = vld [vmem:[#allocation5 + $0x960] ss:$16 sps:$4 sm:$0xff]   ;;  %v6065_v1 = vld [vmem:[#allocation5 + $0x968] ss:$16 sps:$4 sm:$0xff]  }
 0x16f   :  { %2613 = vmatprep.subr.bf16.mxu0 %v5980_v2  ;;  %2859 = vmatprep.subr.bf16.mxu1 %v5983_v3  ;;  %v6070_v2 = vld [vmem:[#allocation5 + $0x984] ss:$16 sps:$4 sm:$0xff]   ;;  %v6073_v3 = vld [vmem:[#allocation5 + $0x98c] ss:$16 sps:$4 sm:$0xff]  }
 0x172   :  { %2614 = vmatpush1.bf16.msra.mxu0 %v5978_v4  ;;  %2860 = vmatpush1.bf16.msra.mxu1 %v5981_v5  ;;  %v6068_v4 = vld [vmem:[#allocation5 + $0x980] ss:$16 sps:$4 sm:$0xff]   ;;  %v6071_v5 = vld [vmem:[#allocation5 + $0x988] ss:$16 sps:$4 sm:$0xff]  }
 0x173   :  { %2615 = vmatprep.subr.bf16.mxu0 %v5986_v6  ;;  %2861 = vmatprep.subr.bf16.mxu1 %v5989_v7  ;;  %v6076_v6 = vld [vmem:[#allocation5 + $0x9a4] ss:$16 sps:$4 sm:$0xff]   ;;  %v6079_v7 = vld [vmem:[#allocation5 + $0x9ac] ss:$16 sps:$4 sm:$0xff]  }
 0x176   :  { %2616 = vmatpush1.bf16.msra.mxu0 %v5984_v8  ;;  %2862 = vmatpush1.bf16.msra.mxu1 %v5987_v9  ;;  %v6074_v8 = vld [vmem:[#allocation5 + $0x9a0] ss:$16 sps:$4 sm:$0xff]   ;;  %v6077_v9 = vld [vmem:[#allocation5 + $0x9a8] ss:$16 sps:$4 sm:$0xff]  }
 0x177   :  { %2617 = vmatprep.subr.bf16.mxu0 %v5992_v10  ;;  %2863 = vmatprep.subr.bf16.mxu1 %v5995_v11  ;;  %v6082_v10 = vld [vmem:[#allocation5 + $0x9c4] ss:$16 sps:$4 sm:$0xff]   ;;  %v6085_v11 = vld [vmem:[#allocation5 + $0x9cc] ss:$16 sps:$4 sm:$0xff]  }
 0x17a   :  { %2618 = vmatpush1.bf16.msra.mxu0 %v5990_v12  ;;  %2864 = vmatpush1.bf16.msra.mxu1 %v5993_v13  ;;  %v6080_v12 = vld [vmem:[#allocation5 + $0x9c0] ss:$16 sps:$4 sm:$0xff]   ;;  %v6083_v13 = vld [vmem:[#allocation5 + $0x9c8] ss:$16 sps:$4 sm:$0xff]  }
 0x17b   :  { %2628 = vmatprep.subr.bf16.mxu0 %v5998_v15  ;;  %2874 = vmatprep.subr.bf16.mxu1 %v6001_v16  ;;  %v6091_v15 = vld [vmem:[#allocation5 + $0x9ec] ss:$16 sps:$4 sm:$0xff]   ;;  %v6086_v16 = vld [vmem:[#allocation5 + $0x9e0] ss:$16 sps:$4 sm:$0xff]  }
 0x17d   :  { %2620 = vmatmul.mubr.bf16.vlgmr.msra.gmra.mrb[0].mxu0 %v132_v17  ;;  %2866 = vmatmul.mubr.bf16.vlgmr.msra.gmra.mrb[0].mxu1 %v132_v17  ;;  %v6089_v17 = vld [vmem:[#allocation5 + $0x9e8] ss:$16 sps:$4 sm:$0xff]  }
 0x17e   :  { %2629 = vmatpush1.bf16.msra.mxu0 %v5996_v19  ;;  %2875 = vmatpush1.bf16.msra.mxu1 %v5999_v20  ;;  %v6097_v19 = vld [vmem:[#allocation5 + $0xa0c] ss:$16 sps:$4 sm:$0xff]   ;;  %v122_v20 = vld [vmem:[#allocation2 + $0x40] sm:$0xff] }
 0x17f   :  { %2630 = vmatprep.subr.bf16.mxu0 %v6004_v21  ;;  %2876 = vmatprep.subr.bf16.mxu1 %v6007_v22  ;;  %v125_v21 = vld [vmem:[#allocation2 + $0x58] sm:$0xff]  ;;  %v6092_v22 = vld [vmem:[#allocation5 + $0xa00] ss:$16 sps:$4 sm:$0xff]  }
 0x180   :  { %2660 = vmatprep.mubr.bf16.mxu0 %v135_v23  ;;  %2906 = vmatprep.mubr.bf16.mxu1 %v135_v23  ;;  %v6095_v23 = vld [vmem:[#allocation5 + $0xa08] ss:$16 sps:$4 sm:$0xff]  }
 0x182   :  { %2631 = vmatpush1.bf16.msra.mxu0 %v6002_v24  ;;  %2877 = vmatpush1.bf16.msra.mxu1 %v6005_v25  ;;  %v134_v24 = vpack.c.bf16 %v122_v20, %v122_v20  ;;  %v6100_v25 = vld [vmem:[#allocation5 + $0xa24] ss:$16 sps:$4 sm:$0xff]   ;;  %v6182_v20 = vld [vmem:[#allocation5 + $0xbe0] ss:$16 sps:$4 sm:$0xff]  }
 0x183   :  { %2632 = vmatprep.subr.bf16.mxu0 %v6010_v26  ;;  %2878 = vmatprep.subr.bf16.mxu1 %v6013_v27  ;;  %v6103_v26 = vld [vmem:[#allocation5 + $0xa2c] ss:$16 sps:$4 sm:$0xff]   ;;  %v6098_v27 = vld [vmem:[#allocation5 + $0xa20] ss:$16 sps:$4 sm:$0xff]  }
 0x186   :  { %2633 = vmatpush1.bf16.msra.mxu0 %v6008_v28  ;;  %2879 = vmatpush1.bf16.msra.mxu1 %v6011_v29  ;;  %v6101_v28 = vld [vmem:[#allocation5 + $0xa28] ss:$16 sps:$4 sm:$0xff]   ;;  %v137_v29 = vpack.c.bf16 %v125_v21, %v125_v21 }
 0x187   :  { %2634 = vmatprep.subr.bf16.mxu0 %v6016_v30  ;;  %2880 = vmatprep.subr.bf16.mxu1 %v6019_v31  ;;  %v6106_v30 = vld [vmem:[#allocation5 + $0xa44] ss:$16 sps:$4 sm:$0xff]   ;;  %v6109_v31 = vld [vmem:[#allocation5 + $0xa4c] ss:$16 sps:$4 sm:$0xff]   ;;  %v6185_v21 = vld [vmem:[#allocation5 + $0xbe8] ss:$16 sps:$4 sm:$0xff]  }
 0x18a   :  { %2635 = vmatpush1.bf16.msra.mxu0 %v6014_v32  ;;  %2881 = vmatpush1.bf16.msra.mxu1 %v6017_v33  ;;  %v6104_v32 = vld [vmem:[#allocation5 + $0xa40] ss:$16 sps:$4 sm:$0xff]   ;;  %v6107_v33 = vld [vmem:[#allocation5 + $0xa48] ss:$16 sps:$4 sm:$0xff]  }
 0x18b   :  { %2636 = vmatprep.subr.bf16.mxu0 %v6022_v34  ;;  %2882 = vmatprep.subr.bf16.mxu1 %v6025_v35  ;;  %v6112_v34 = vld [vmem:[#allocation5 + $0xa64] ss:$16 sps:$4 sm:$0xff]   ;;  %v6115_v35 = vld [vmem:[#allocation5 + $0xa6c] ss:$16 sps:$4 sm:$0xff]  }
 0x18e   :  { %2637 = vmatpush1.bf16.msra.mxu0 %v6020_v36  ;;  %2883 = vmatpush1.bf16.msra.mxu1 %v6023_v37  ;;  %v6110_v36 = vld [vmem:[#allocation5 + $0xa60] ss:$16 sps:$4 sm:$0xff]   ;;  %v6113_v37 = vld [vmem:[#allocation5 + $0xa68] ss:$16 sps:$4 sm:$0xff]  }
 0x18f   :  { %2638 = vmatprep.subr.bf16.mxu0 %v6028_v38  ;;  %2884 = vmatprep.subr.bf16.mxu1 %v6031_v39  ;;  %v6118_v38 = vld [vmem:[#allocation5 + $0xa84] ss:$16 sps:$4 sm:$0xff]   ;;  %v6121_v39 = vld [vmem:[#allocation5 + $0xa8c] ss:$16 sps:$4 sm:$0xff]  }
 0x192   :  { %2639 = vmatpush1.bf16.msra.mxu0 %v6026_v40  ;;  %2885 = vmatpush1.bf16.msra.mxu1 %v6029_v41  ;;  %v6116_v40 = vld [vmem:[#allocation5 + $0xa80] ss:$16 sps:$4 sm:$0xff]   ;;  %v6119_v41 = vld [vmem:[#allocation5 + $0xa88] ss:$16 sps:$4 sm:$0xff]  }
 0x193   :  { %2640 = vmatprep.subr.bf16.mxu0 %v6034_v42  ;;  %2886 = vmatprep.subr.bf16.mxu1 %v6037_v43  ;;  %v6124_v42 = vld [vmem:[#allocation5 + $0xaa4] ss:$16 sps:$4 sm:$0xff]   ;;  %v6127_v43 = vld [vmem:[#allocation5 + $0xaac] ss:$16 sps:$4 sm:$0xff]  }
 0x196   :  { %2641 = vmatpush1.bf16.msra.mxu0 %v6032_v44  ;;  %2887 = vmatpush1.bf16.msra.mxu1 %v6035_v45  ;;  %v6122_v44 = vld [vmem:[#allocation5 + $0xaa0] ss:$16 sps:$4 sm:$0xff]   ;;  %v6125_v45 = vld [vmem:[#allocation5 + $0xaa8] ss:$16 sps:$4 sm:$0xff]  }
 0x197   :  { %2642 = vmatprep.subr.bf16.mxu0 %v6040_v46  ;;  %2888 = vmatprep.subr.bf16.mxu1 %v6043_v47  ;;  %v6130_v46 = vld [vmem:[#allocation5 + $0xac4] ss:$16 sps:$4 sm:$0xff]   ;;  %v6133_v47 = vld [vmem:[#allocation5 + $0xacc] ss:$16 sps:$4 sm:$0xff]  }
 0x19a   :  { %2643 = vmatpush1.bf16.msra.mxu0 %v6038_v48  ;;  %2889 = vmatpush1.bf16.msra.mxu1 %v6041_v49  ;;  %v6128_v48 = vld [vmem:[#allocation5 + $0xac0] ss:$16 sps:$4 sm:$0xff]   ;;  %v6131_v49 = vld [vmem:[#allocation5 + $0xac8] ss:$16 sps:$4 sm:$0xff]  }
 0x19b   :  { %2644 = vmatprep.subr.bf16.mxu0 %v6046_v50  ;;  %2890 = vmatprep.subr.bf16.mxu1 %v6049_v51  ;;  %v6136_v50 = vld [vmem:[#allocation5 + $0xae4] ss:$16 sps:$4 sm:$0xff]   ;;  %v6139_v51 = vld [vmem:[#allocation5 + $0xaec] ss:$16 sps:$4 sm:$0xff]  }
 0x19e   :  { %2645 = vmatpush1.bf16.msra.mxu0 %v6044_v52  ;;  %2891 = vmatpush1.bf16.msra.mxu1 %v6047_v53  ;;  %v6134_v52 = vld [vmem:[#allocation5 + $0xae0] ss:$16 sps:$4 sm:$0xff]   ;;  %v6137_v53 = vld [vmem:[#allocation5 + $0xae8] ss:$16 sps:$4 sm:$0xff]  }
 0x19f   :  { %2646 = vmatprep.subr.bf16.mxu0 %v6052_v54  ;;  %2892 = vmatprep.subr.bf16.mxu1 %v6055_v55  ;;  %v6142_v54 = vld [vmem:[#allocation5 + $0xb04] ss:$16 sps:$4 sm:$0xff]   ;;  %v6145_v55 = vld [vmem:[#allocation5 + $0xb0c] ss:$16 sps:$4 sm:$0xff]  }
 0x1a2   :  { %2647 = vmatpush1.bf16.msra.mxu0 %v6050_v56  ;;  %2893 = vmatpush1.bf16.msra.mxu1 %v6053_v57  ;;  %v6140_v56 = vld [vmem:[#allocation5 + $0xb00] ss:$16 sps:$4 sm:$0xff]   ;;  %v6143_v57 = vld [vmem:[#allocation5 + $0xb08] ss:$16 sps:$4 sm:$0xff]  }
 0x1a3   :  { %2648 = vmatprep.subr.bf16.mxu0 %v6058_v58  ;;  %2894 = vmatprep.subr.bf16.mxu1 %v6061_v59  ;;  %v6148_v58 = vld [vmem:[#allocation5 + $0xb24] ss:$16 sps:$4 sm:$0xff]   ;;  %v6151_v59 = vld [vmem:[#allocation5 + $0xb2c] ss:$16 sps:$4 sm:$0xff]  }
 0x1a6   :  { %2649 = vmatpush1.bf16.msra.mxu0 %v6056_v60  ;;  %2895 = vmatpush1.bf16.msra.mxu1 %v6059_v61  ;;  %v6146_v60 = vld [vmem:[#allocation5 + $0xb20] ss:$16 sps:$4 sm:$0xff]   ;;  %v6149_v61 = vld [vmem:[#allocation5 + $0xb28] ss:$16 sps:$4 sm:$0xff]  }
 0x1a7   :  { %2650 = vmatprep.subr.bf16.mxu0 %v6064_v62  ;;  %2896 = vmatprep.subr.bf16.mxu1 %v6067_v63  ;;  %v6154_v62 = vld [vmem:[#allocation5 + $0xb44] ss:$16 sps:$4 sm:$0xff]   ;;  %v6157_v63 = vld [vmem:[#allocation5 + $0xb4c] ss:$16 sps:$4 sm:$0xff]  }
 0x1aa   :  { %2651 = vmatpush1.bf16.msra.mxu0 %v6062_v0  ;;  %2897 = vmatpush1.bf16.msra.mxu1 %v6065_v1  ;;  %v6152_v0 = vld [vmem:[#allocation5 + $0xb40] ss:$16 sps:$4 sm:$0xff]   ;;  %v6155_v1 = vld [vmem:[#allocation5 + $0xb48] ss:$16 sps:$4 sm:$0xff]  }
 0x1ab   :  { %2652 = vmatprep.subr.bf16.mxu0 %v6070_v2  ;;  %2898 = vmatprep.subr.bf16.mxu1 %v6073_v3  ;;  %v6160_v2 = vld [vmem:[#allocation5 + $0xb64] ss:$16 sps:$4 sm:$0xff]   ;;  %v6163_v3 = vld [vmem:[#allocation5 + $0xb6c] ss:$16 sps:$4 sm:$0xff]  }
 0x1ae   :  { %2653 = vmatpush1.bf16.msra.mxu0 %v6068_v4  ;;  %2899 = vmatpush1.bf16.msra.mxu1 %v6071_v5  ;;  %v6158_v4 = vld [vmem:[#allocation5 + $0xb60] ss:$16 sps:$4 sm:$0xff]   ;;  %v6161_v5 = vld [vmem:[#allocation5 + $0xb68] ss:$16 sps:$4 sm:$0xff]  }
 0x1af   :  { %2654 = vmatprep.subr.bf16.mxu0 %v6076_v6  ;;  %2900 = vmatprep.subr.bf16.mxu1 %v6079_v7  ;;  %v6166_v6 = vld [vmem:[#allocation5 + $0xb84] ss:$16 sps:$4 sm:$0xff]   ;;  %v6169_v7 = vld [vmem:[#allocation5 + $0xb8c] ss:$16 sps:$4 sm:$0xff]  }
 0x1b2   :  { %2655 = vmatpush1.bf16.msra.mxu0 %v6074_v8  ;;  %2901 = vmatpush1.bf16.msra.mxu1 %v6077_v9  ;;  %v6164_v8 = vld [vmem:[#allocation5 + $0xb80] ss:$16 sps:$4 sm:$0xff]   ;;  %v6167_v9 = vld [vmem:[#allocation5 + $0xb88] ss:$16 sps:$4 sm:$0xff]  }
 0x1b3   :  { %2656 = vmatprep.subr.bf16.mxu0 %v6082_v10  ;;  %2902 = vmatprep.subr.bf16.mxu1 %v6085_v11  ;;  %v6172_v10 = vld [vmem:[#allocation5 + $0xba4] ss:$16 sps:$4 sm:$0xff]   ;;  %v6175_v11 = vld [vmem:[#allocation5 + $0xbac] ss:$16 sps:$4 sm:$0xff]  }
 0x1b6   :  { %2657 = vmatpush1.bf16.msra.mxu0 %v6080_v12  ;;  %2903 = vmatpush1.bf16.msra.mxu1 %v6083_v13  ;;  %v6170_v12 = vld [vmem:[#allocation5 + $0xba0] ss:$16 sps:$4 sm:$0xff]   ;;  %v6173_v13 = vld [vmem:[#allocation5 + $0xba8] ss:$16 sps:$4 sm:$0xff]  }
 0x1b7   :  { %2658 = vmatprep.subr.bf16.mxu0 %v6088_v14  ;;  %2904 = vmatprep.subr.bf16.mxu1 %v6091_v15  ;;  %v6178_v14 = vld [vmem:[#allocation5 + $0xbc4] ss:$16 sps:$4 sm:$0xff]   ;;  %v6181_v15 = vld [vmem:[#allocation5 + $0xbcc] ss:$16 sps:$4 sm:$0xff]  }
 0x1ba   :  { %2659 = vmatpush1.bf16.msra.mxu0 %v6086_v16  ;;  %2905 = vmatpush1.bf16.msra.mxu1 %v6089_v17  ;;  %v6176_v16 = vld [vmem:[#allocation5 + $0xbc0] ss:$16 sps:$4 sm:$0xff]   ;;  %v6179_v17 = vld [vmem:[#allocation5 + $0xbc8] ss:$16 sps:$4 sm:$0xff]  }
 0x1bb   :  { %2669 = vmatprep.subr.bf16.mxu0 %v6094_v18  ;;  %2915 = vmatprep.subr.bf16.mxu1 %v6097_v19  ;;  %v6184_v18 = vld [vmem:[#allocation5 + $0xbe4] ss:$16 sps:$4 sm:$0xff]   ;;  %v6187_v19 = vld [vmem:[#allocation5 + $0xbec] ss:$16 sps:$4 sm:$0xff]  }
 0x1bd   :  { %2661 = vmatmul.mubr.bf16.vlgmr.msra.gmra.mrb[0].mxu0 %v134_v24  ;;  %2907 = vmatmul.mubr.bf16.vlgmr.msra.gmra.mrb[0].mxu1 %v134_v24  ;;  %v6193_v24 = vld [vmem:[#allocation8 + $0xc] ss:$16 sps:$4 sm:$0xff]  }
 0x1be   :  { %2670 = vmatpush1.bf16.msra.mxu0 %v6092_v22  ;;  %2916 = vmatpush1.bf16.msra.mxu1 %v6095_v23  ;;  %v124_v22 = vld [vmem:[#allocation2 + $0x50] sm:$0xff]  ;;  %v6190_v23 = vld [vmem:[#allocation8 + $0x4] ss:$16 sps:$4 sm:$0xff]  }
 0x1bf   :  { %2671 = vmatprep.subr.bf16.mxu0 %v6100_v25  ;;  %2917 = vmatprep.subr.bf16.mxu1 %v6103_v26  ;;  %v136_v25 = vpack.c.bf16 %v124_v22, %v124_v22  ;;  %v6188_v26 = vld [vmem:[#allocation8] ss:$16 sps:$4 sm:$0xff]  }
 0x1c0   :  { %2701 = vmatprep.mubr.bf16.mxu0 %v137_v29  ;;  %2947 = vmatprep.mubr.bf16.mxu1 %v137_v29  ;;  %v6199_v29 = vld [vmem:[#allocation8 + $0x2c] ss:$16 sps:$4 sm:$0xff]   ;;  %v6278_v22 = vld [vmem:[#allocation8 + $0x1e0] ss:$16 sps:$4 sm:$0xff]  }
 0x1c2   :  { %2672 = vmatpush1.bf16.msra.mxu0 %v6098_v27  ;;  %2918 = vmatpush1.bf16.msra.mxu1 %v6101_v28  ;;  %v6191_v27 = vld [vmem:[#allocation8 + $0x8] ss:$16 sps:$4 sm:$0xff]   ;;  %v6196_v28 = vld [vmem:[#allocation8 + $0x24] ss:$16 sps:$4 sm:$0xff]  }
 0x1c3   :  { %2673 = vmatprep.subr.bf16.mxu0 %v6106_v30  ;;  %2919 = vmatprep.subr.bf16.mxu1 %v6109_v31  ;;  %v6194_v30 = vld [vmem:[#allocation8 + $0x20] ss:$16 sps:$4 sm:$0xff]   ;;  %v6197_v31 = vld [vmem:[#allocation8 + $0x28] ss:$16 sps:$4 sm:$0xff]  }
 0x1c6   :  { %2674 = vmatpush1.bf16.msra.mxu0 %v6104_v32  ;;  %2920 = vmatpush1.bf16.msra.mxu1 %v6107_v33  ;;  %v6202_v32 = vld [vmem:[#allocation8 + $0x44] ss:$16 sps:$4 sm:$0xff]   ;;  %v6205_v33 = vld [vmem:[#allocation8 + $0x4c] ss:$16 sps:$4 sm:$0xff]  }
 0x1c7   :  { %2675 = vmatprep.subr.bf16.mxu0 %v6112_v34  ;;  %2921 = vmatprep.subr.bf16.mxu1 %v6115_v35  ;;  %v6200_v34 = vld [vmem:[#allocation8 + $0x40] ss:$16 sps:$4 sm:$0xff]   ;;  %v6203_v35 = vld [vmem:[#allocation8 + $0x48] ss:$16 sps:$4 sm:$0xff]  }
 0x1ca   :  { %2676 = vmatpush1.bf16.msra.mxu0 %v6110_v36  ;;  %2922 = vmatpush1.bf16.msra.mxu1 %v6113_v37  ;;  %v6208_v36 = vld [vmem:[#allocation8 + $0x64] ss:$16 sps:$4 sm:$0xff]   ;;  %v6211_v37 = vld [vmem:[#allocation8 + $0x6c] ss:$16 sps:$4 sm:$0xff]  }
 0x1cb   :  { %2677 = vmatprep.subr.bf16.mxu0 %v6118_v38  ;;  %2923 = vmatprep.subr.bf16.mxu1 %v6121_v39  ;;  %v6206_v38 = vld [vmem:[#allocation8 + $0x60] ss:$16 sps:$4 sm:$0xff]   ;;  %v6209_v39 = vld [vmem:[#allocation8 + $0x68] ss:$16 sps:$4 sm:$0xff]  }
 0x1ce   :  { %2678 = vmatpush1.bf16.msra.mxu0 %v6116_v40  ;;  %2924 = vmatpush1.bf16.msra.mxu1 %v6119_v41  ;;  %v6214_v40 = vld [vmem:[#allocation8 + $0x84] ss:$16 sps:$4 sm:$0xff]   ;;  %v6217_v41 = vld [vmem:[#allocation8 + $0x8c] ss:$16 sps:$4 sm:$0xff]  }
 0x1cf   :  { %2679 = vmatprep.subr.bf16.mxu0 %v6124_v42  ;;  %2925 = vmatprep.subr.bf16.mxu1 %v6127_v43  ;;  %v6212_v42 = vld [vmem:[#allocation8 + $0x80] ss:$16 sps:$4 sm:$0xff]   ;;  %v6215_v43 = vld [vmem:[#allocation8 + $0x88] ss:$16 sps:$4 sm:$0xff]  }
 0x1d2   :  { %2680 = vmatpush1.bf16.msra.mxu0 %v6122_v44  ;;  %2926 = vmatpush1.bf16.msra.mxu1 %v6125_v45  ;;  %v6220_v44 = vld [vmem:[#allocation8 + $0xa4] ss:$16 sps:$4 sm:$0xff]   ;;  %v6223_v45 = vld [vmem:[#allocation8 + $0xac] ss:$16 sps:$4 sm:$0xff]  }
 0x1d3   :  { %2681 = vmatprep.subr.bf16.mxu0 %v6130_v46  ;;  %2927 = vmatprep.subr.bf16.mxu1 %v6133_v47  ;;  %v6218_v46 = vld [vmem:[#allocation8 + $0xa0] ss:$16 sps:$4 sm:$0xff]   ;;  %v6221_v47 = vld [vmem:[#allocation8 + $0xa8] ss:$16 sps:$4 sm:$0xff]  }
 0x1d6   :  { %2682 = vmatpush1.bf16.msra.mxu0 %v6128_v48  ;;  %2928 = vmatpush1.bf16.msra.mxu1 %v6131_v49  ;;  %v6226_v48 = vld [vmem:[#allocation8 + $0xc4] ss:$16 sps:$4 sm:$0xff]   ;;  %v6229_v49 = vld [vmem:[#allocation8 + $0xcc] ss:$16 sps:$4 sm:$0xff]  }
 0x1d7   :  { %2683 = vmatprep.subr.bf16.mxu0 %v6136_v50  ;;  %2929 = vmatprep.subr.bf16.mxu1 %v6139_v51  ;;  %v6224_v50 = vld [vmem:[#allocation8 + $0xc0] ss:$16 sps:$4 sm:$0xff]   ;;  %v6227_v51 = vld [vmem:[#allocation8 + $0xc8] ss:$16 sps:$4 sm:$0xff]  }
 0x1da   :  { %2684 = vmatpush1.bf16.msra.mxu0 %v6134_v52  ;;  %2930 = vmatpush1.bf16.msra.mxu1 %v6137_v53  ;;  %v6232_v52 = vld [vmem:[#allocation8 + $0xe4] ss:$16 sps:$4 sm:$0xff]   ;;  %v6235_v53 = vld [vmem:[#allocation8 + $0xec] ss:$16 sps:$4 sm:$0xff]  }
 0x1db   :  { %2685 = vmatprep.subr.bf16.mxu0 %v6142_v54  ;;  %2931 = vmatprep.subr.bf16.mxu1 %v6145_v55  ;;  %v6230_v54 = vld [vmem:[#allocation8 + $0xe0] ss:$16 sps:$4 sm:$0xff]   ;;  %v6233_v55 = vld [vmem:[#allocation8 + $0xe8] ss:$16 sps:$4 sm:$0xff]  }
 0x1de   :  { %2686 = vmatpush1.bf16.msra.mxu0 %v6140_v56  ;;  %2932 = vmatpush1.bf16.msra.mxu1 %v6143_v57  ;;  %v6238_v56 = vld [vmem:[#allocation8 + $0x104] ss:$16 sps:$4 sm:$0xff]   ;;  %v6241_v57 = vld [vmem:[#allocation8 + $0x10c] ss:$16 sps:$4 sm:$0xff]  }
 0x1df   :  { %2687 = vmatprep.subr.bf16.mxu0 %v6148_v58  ;;  %2933 = vmatprep.subr.bf16.mxu1 %v6151_v59  ;;  %v6236_v58 = vld [vmem:[#allocation8 + $0x100] ss:$16 sps:$4 sm:$0xff]   ;;  %v6239_v59 = vld [vmem:[#allocation8 + $0x108] ss:$16 sps:$4 sm:$0xff]  }
 0x1e2   :  { %2688 = vmatpush1.bf16.msra.mxu0 %v6146_v60  ;;  %2934 = vmatpush1.bf16.msra.mxu1 %v6149_v61  ;;  %v6244_v60 = vld [vmem:[#allocation8 + $0x124] ss:$16 sps:$4 sm:$0xff]   ;;  %v6247_v61 = vld [vmem:[#allocation8 + $0x12c] ss:$16 sps:$4 sm:$0xff]  }
 0x1e3   :  { %2689 = vmatprep.subr.bf16.mxu0 %v6154_v62  ;;  %2935 = vmatprep.subr.bf16.mxu1 %v6157_v63  ;;  %v6242_v62 = vld [vmem:[#allocation8 + $0x120] ss:$16 sps:$4 sm:$0xff]   ;;  %v6245_v63 = vld [vmem:[#allocation8 + $0x128] ss:$16 sps:$4 sm:$0xff]  }
 0x1e6   :  { %2690 = vmatpush1.bf16.msra.mxu0 %v6152_v0  ;;  %2936 = vmatpush1.bf16.msra.mxu1 %v6155_v1  ;;  %v6250_v0 = vld [vmem:[#allocation8 + $0x144] ss:$16 sps:$4 sm:$0xff]   ;;  %v6253_v1 = vld [vmem:[#allocation8 + $0x14c] ss:$16 sps:$4 sm:$0xff]  }
 0x1e7   :  { %2691 = vmatprep.subr.bf16.mxu0 %v6160_v2  ;;  %2937 = vmatprep.subr.bf16.mxu1 %v6163_v3  ;;  %v6248_v2 = vld [vmem:[#allocation8 + $0x140] ss:$16 sps:$4 sm:$0xff]   ;;  %v6251_v3 = vld [vmem:[#allocation8 + $0x148] ss:$16 sps:$4 sm:$0xff]  }
 0x1ea   :  { %2692 = vmatpush1.bf16.msra.mxu0 %v6158_v4  ;;  %2938 = vmatpush1.bf16.msra.mxu1 %v6161_v5  ;;  %v6256_v4 = vld [vmem:[#allocation8 + $0x164] ss:$16 sps:$4 sm:$0xff]   ;;  %v6259_v5 = vld [vmem:[#allocation8 + $0x16c] ss:$16 sps:$4 sm:$0xff]  }
 0x1eb   :  { %2693 = vmatprep.subr.bf16.mxu0 %v6166_v6  ;;  %2939 = vmatprep.subr.bf16.mxu1 %v6169_v7  ;;  %v6254_v6 = vld [vmem:[#allocation8 + $0x160] ss:$16 sps:$4 sm:$0xff]   ;;  %v6257_v7 = vld [vmem:[#allocation8 + $0x168] ss:$16 sps:$4 sm:$0xff]  }
 0x1ee   :  { %2694 = vmatpush1.bf16.msra.mxu0 %v6164_v8  ;;  %2940 = vmatpush1.bf16.msra.mxu1 %v6167_v9  ;;  %v6262_v8 = vld [vmem:[#allocation8 + $0x184] ss:$16 sps:$4 sm:$0xff]   ;;  %v6265_v9 = vld [vmem:[#allocation8 + $0x18c] ss:$16 sps:$4 sm:$0xff]  }
 0x1ef   :  { %2695 = vmatprep.subr.bf16.mxu0 %v6172_v10  ;;  %2941 = vmatprep.subr.bf16.mxu1 %v6175_v11  ;;  %v6260_v10 = vld [vmem:[#allocation8 + $0x180] ss:$16 sps:$4 sm:$0xff]   ;;  %v6263_v11 = vld [vmem:[#allocation8 + $0x188] ss:$16 sps:$4 sm:$0xff]  }
 0x1f2   :  { %2696 = vmatpush1.bf16.msra.mxu0 %v6170_v12  ;;  %2942 = vmatpush1.bf16.msra.mxu1 %v6173_v13  ;;  %v6268_v12 = vld [vmem:[#allocation8 + $0x1a4] ss:$16 sps:$4 sm:$0xff]   ;;  %v6271_v13 = vld [vmem:[#allocation8 + $0x1ac] ss:$16 sps:$4 sm:$0xff]  }
 0x1f3   :  { %2697 = vmatprep.subr.bf16.mxu0 %v6178_v14  ;;  %2943 = vmatprep.subr.bf16.mxu1 %v6181_v15  ;;  %v6266_v14 = vld [vmem:[#allocation8 + $0x1a0] ss:$16 sps:$4 sm:$0xff]   ;;  %v6269_v15 = vld [vmem:[#allocation8 + $0x1a8] ss:$16 sps:$4 sm:$0xff]  }
 0x1f6   :  { %2698 = vmatpush1.bf16.msra.mxu0 %v6176_v16  ;;  %2944 = vmatpush1.bf16.msra.mxu1 %v6179_v17  ;;  %v6274_v16 = vld [vmem:[#allocation8 + $0x1c4] ss:$16 sps:$4 sm:$0xff]   ;;  %v6277_v17 = vld [vmem:[#allocation8 + $0x1cc] ss:$16 sps:$4 sm:$0xff]  }
 0x1f7   :  { %2699 = vmatprep.subr.bf16.mxu0 %v6184_v18  ;;  %2945 = vmatprep.subr.bf16.mxu1 %v6187_v19  ;;  %v6272_v18 = vld [vmem:[#allocation8 + $0x1c0] ss:$16 sps:$4 sm:$0xff]   ;;  %v6275_v19 = vld [vmem:[#allocation8 + $0x1c8] ss:$16 sps:$4 sm:$0xff]  }
 0x1fa   :  { %2700 = vmatpush1.bf16.msra.mxu0 %v6182_v20  ;;  %2946 = vmatpush1.bf16.msra.mxu1 %v6185_v21  ;;  %v6280_v20 = vld [vmem:[#allocation8 + $0x1e4] ss:$16 sps:$4 sm:$0xff]   ;;  %v6283_v21 = vld [vmem:[#allocation8 + $0x1ec] ss:$16 sps:$4 sm:$0xff]  }
 0x1fb   :  { %3750 = vmatprep.subr.bf16.mxu0 %v6190_v23  ;;  %3832 = vmatprep.subr.bf16.mxu1 %v6193_v24  ;;  %v6281_v23 = vld [vmem:[#allocation8 + $0x1e8] ss:$16 sps:$4 sm:$0xff]   ;;  %v6286_v24 = vld [vmem:[#allocation8 + $0x204] ss:$16 sps:$4 sm:$0xff]  }
 0x1fd   :  { %2702 = vmatmul.mubr.bf16.vlgmr.msra.gmra.mrb[0].mxu0 %v136_v25  ;;  %2948 = vmatmul.mubr.bf16.vlgmr.msra.gmra.mrb[0].mxu1 %v136_v25  ;;  %v6289_v25 = vld [vmem:[#allocation8 + $0x20c] ss:$16 sps:$4 sm:$0xff]  }
 0x1fe   :  { %3751 = vmatpush1.bf16.msra.mxu0 %v6188_v26  ;;  %3833 = vmatpush1.bf16.msra.mxu1 %v6191_v27  ;;  %v524_v26 = vlaneseq }
 0x1ff   :  { %3752 = vmatprep.subr.bf16.mxu0 %v6196_v28  ;;  %3834 = vmatprep.subr.bf16.mxu1 %v6199_v29  ;;  %v6906_v29 = vld [vmem:[#allocation7] sm:$0xf] }
 0x200   :  { %v6901_v27 = vshrl.u32 %v524_v26, 7  ;;  %v6347_v26 = vld [vmem:[#allocation8 + $0x348] ss:$16 sps:$4 sm:$0xff]  }
 0x202   :  { %3753 = vmatpush1.bf16.msra.mxu0 %v6194_v30  ;;  %3835 = vmatpush1.bf16.msra.mxu1 %v6197_v31  ;;  %v6904_v28 = vsub.s32 0, %v6901_v27  ;;  %v6909_v30 = vsub.s32 1, %v6901_v27  ;;  %v6912_v31 = vsub.s32 3, %v6901_v27 }
 0x203   :  { %3754 = vmatprep.subr.bf16.mxu0 %v6202_v32  ;;  %3836 = vmatprep.subr.bf16.mxu1 %v6205_v33 }
 0x204   :  { %v527_v32 = vrot.slane %v6906_v29, %v6904_v28  ;;  %v531_v33 = vrot.slane %v6906_v29, %v6909_v30 }
 0x206   :  { %3755 = vmatpush1.bf16.msra.mxu0 %v6200_v34  ;;  %3837 = vmatpush1.bf16.msra.mxu1 %v6203_v35  ;;  %v539_v34 = vrot.slane %v6906_v29, %v6912_v31 }
 0x207   :  { %3756 = vmatprep.subr.bf16.mxu0 %v6208_v36  ;;  %3838 = vmatprep.subr.bf16.mxu1 %v6211_v37 }
 0x20a   :  { %3757 = vmatpush1.bf16.msra.mxu0 %v6206_v38  ;;  %3839 = vmatpush1.bf16.msra.mxu1 %v6209_v39 }
 0x20b   :  { %3758 = vmatprep.subr.bf16.mxu0 %v6214_v40  ;;  %3840 = vmatprep.subr.bf16.mxu1 %v6217_v41 }
 0x20e   :  { %3759 = vmatpush1.bf16.msra.mxu0 %v6212_v42  ;;  %3841 = vmatpush1.bf16.msra.mxu1 %v6215_v43 }
 0x20f   :  { %3760 = vmatprep.subr.bf16.mxu0 %v6220_v44  ;;  %3842 = vmatprep.subr.bf16.mxu1 %v6223_v45 }
 0x212   :  { %3761 = vmatpush1.bf16.msra.mxu0 %v6218_v46  ;;  %3843 = vmatpush1.bf16.msra.mxu1 %v6221_v47  ;;  %v6284_v47 = vld [vmem:[#allocation8 + $0x200] ss:$16 sps:$4 sm:$0xff]  }
 0x213   :  { %3762 = vmatprep.subr.bf16.mxu0 %v6226_v48  ;;  %3844 = vmatprep.subr.bf16.mxu1 %v6229_v49  ;;  %v6287_v48 = vld [vmem:[#allocation8 + $0x208] ss:$16 sps:$4 sm:$0xff]  }
 0x216   :  { %3763 = vmatpush1.bf16.msra.mxu0 %v6224_v50  ;;  %3845 = vmatpush1.bf16.msra.mxu1 %v6227_v51  ;;  %v6292_v50 = vld [vmem:[#allocation8 + $0x224] ss:$16 sps:$4 sm:$0xff]   ;;  %v6295_v51 = vld [vmem:[#allocation8 + $0x22c] ss:$16 sps:$4 sm:$0xff]  }
 0x217   :  { %3764 = vmatprep.subr.bf16.mxu0 %v6232_v52  ;;  %3846 = vmatprep.subr.bf16.mxu1 %v6235_v53  ;;  %v6290_v53 = vld [vmem:[#allocation8 + $0x220] ss:$16 sps:$4 sm:$0xff]  }
 0x21a   :  { %3765 = vmatpush1.bf16.msra.mxu0 %v6230_v54  ;;  %3847 = vmatpush1.bf16.msra.mxu1 %v6233_v55  ;;  %v6293_v54 = vld [vmem:[#allocation8 + $0x228] ss:$16 sps:$4 sm:$0xff]   ;;  %v6298_v55 = vld [vmem:[#allocation8 + $0x244] ss:$16 sps:$4 sm:$0xff]  }
 0x21b   :  { %3766 = vmatprep.subr.bf16.mxu0 %v6238_v56  ;;  %3848 = vmatprep.subr.bf16.mxu1 %v6241_v57  ;;  %v6301_v56 = vld [vmem:[#allocation8 + $0x24c] ss:$16 sps:$4 sm:$0xff]   ;;  %v6296_v57 = vld [vmem:[#allocation8 + $0x240] ss:$16 sps:$4 sm:$0xff]  }
 0x21e   :  { %3767 = vmatpush1.bf16.msra.mxu0 %v6236_v58  ;;  %3849 = vmatpush1.bf16.msra.mxu1 %v6239_v59  ;;  %v6299_v58 = vld [vmem:[#allocation8 + $0x248] ss:$16 sps:$4 sm:$0xff]   ;;  %v6304_v59 = vld [vmem:[#allocation8 + $0x264] ss:$16 sps:$4 sm:$0xff]  }
 0x21f   :  { %3768 = vmatprep.subr.bf16.mxu0 %v6244_v60  ;;  %3850 = vmatprep.subr.bf16.mxu1 %v6247_v61  ;;  %v6307_v60 = vld [vmem:[#allocation8 + $0x26c] ss:$16 sps:$4 sm:$0xff]   ;;  %v6302_v61 = vld [vmem:[#allocation8 + $0x260] ss:$16 sps:$4 sm:$0xff]  }
 0x222   :  { %3769 = vmatpush1.bf16.msra.mxu0 %v6242_v62  ;;  %3851 = vmatpush1.bf16.msra.mxu1 %v6245_v63  ;;  %v6305_v62 = vld [vmem:[#allocation8 + $0x268] ss:$16 sps:$4 sm:$0xff]   ;;  %v6310_v63 = vld [vmem:[#allocation8 + $0x284] ss:$16 sps:$4 sm:$0xff]  }
 0x223   :  { %3770 = vmatprep.subr.bf16.mxu0 %v6250_v0  ;;  %3852 = vmatprep.subr.bf16.mxu1 %v6253_v1  ;;  %v6313_v0 = vld [vmem:[#allocation8 + $0x28c] ss:$16 sps:$4 sm:$0xff]   ;;  %v6308_v1 = vld [vmem:[#allocation8 + $0x280] ss:$16 sps:$4 sm:$0xff]  }
 0x226   :  { %3771 = vmatpush1.bf16.msra.mxu0 %v6248_v2  ;;  %3853 = vmatpush1.bf16.msra.mxu1 %v6251_v3  ;;  %v6311_v2 = vld [vmem:[#allocation8 + $0x288] ss:$16 sps:$4 sm:$0xff]   ;;  %v6316_v3 = vld [vmem:[#allocation8 + $0x2a4] ss:$16 sps:$4 sm:$0xff]  }
 0x227   :  { %3772 = vmatprep.subr.bf16.mxu0 %v6256_v4  ;;  %3854 = vmatprep.subr.bf16.mxu1 %v6259_v5  ;;  %v6319_v4 = vld [vmem:[#allocation8 + $0x2ac] ss:$16 sps:$4 sm:$0xff]   ;;  %v6314_v5 = vld [vmem:[#allocation8 + $0x2a0] ss:$16 sps:$4 sm:$0xff]  }
 0x22a   :  { %3773 = vmatpush1.bf16.msra.mxu0 %v6254_v6  ;;  %3855 = vmatpush1.bf16.msra.mxu1 %v6257_v7  ;;  %v6317_v6 = vld [vmem:[#allocation8 + $0x2a8] ss:$16 sps:$4 sm:$0xff]   ;;  %v6322_v7 = vld [vmem:[#allocation8 + $0x2c4] ss:$16 sps:$4 sm:$0xff]  }
 0x22b   :  { %3774 = vmatprep.subr.bf16.mxu0 %v6262_v8  ;;  %3856 = vmatprep.subr.bf16.mxu1 %v6265_v9  ;;  %v6325_v8 = vld [vmem:[#allocation8 + $0x2cc] ss:$16 sps:$4 sm:$0xff]   ;;  %v6320_v9 = vld [vmem:[#allocation8 + $0x2c0] ss:$16 sps:$4 sm:$0xff]  }
 0x22e   :  { %3775 = vmatpush1.bf16.msra.mxu0 %v6260_v10  ;;  %3857 = vmatpush1.bf16.msra.mxu1 %v6263_v11  ;;  %v6323_v10 = vld [vmem:[#allocation8 + $0x2c8] ss:$16 sps:$4 sm:$0xff]   ;;  %v6328_v11 = vld [vmem:[#allocation8 + $0x2e4] ss:$16 sps:$4 sm:$0xff]  }
 0x22f   :  { %3776 = vmatprep.subr.bf16.mxu0 %v6268_v12  ;;  %3858 = vmatprep.subr.bf16.mxu1 %v6271_v13  ;;  %v6331_v12 = vld [vmem:[#allocation8 + $0x2ec] ss:$16 sps:$4 sm:$0xff]   ;;  %v6326_v13 = vld [vmem:[#allocation8 + $0x2e0] ss:$16 sps:$4 sm:$0xff]  }
 0x232   :  { %3777 = vmatpush1.bf16.msra.mxu0 %v6266_v14  ;;  %3859 = vmatpush1.bf16.msra.mxu1 %v6269_v15  ;;  %v6329_v14 = vld [vmem:[#allocation8 + $0x2e8] ss:$16 sps:$4 sm:$0xff]   ;;  %v6334_v15 = vld [vmem:[#allocation8 + $0x304] ss:$16 sps:$4 sm:$0xff]  }
 0x233   :  { %3778 = vmatprep.subr.bf16.mxu0 %v6274_v16  ;;  %3860 = vmatprep.subr.bf16.mxu1 %v6277_v17  ;;  %v6337_v16 = vld [vmem:[#allocation8 + $0x30c] ss:$16 sps:$4 sm:$0xff]   ;;  %v6332_v17 = vld [vmem:[#allocation8 + $0x300] ss:$16 sps:$4 sm:$0xff]  }
 0x236   :  { %3779 = vmatpush1.bf16.msra.mxu0 %v6272_v18  ;;  %3861 = vmatpush1.bf16.msra.mxu1 %v6275_v19  ;;  %v6335_v18 = vld [vmem:[#allocation8 + $0x308] ss:$16 sps:$4 sm:$0xff]   ;;  %v6340_v19 = vld [vmem:[#allocation8 + $0x324] ss:$16 sps:$4 sm:$0xff]  }
 0x237   :  { %3780 = vmatprep.subr.bf16.mxu0 %v6280_v20  ;;  %3862 = vmatprep.subr.bf16.mxu1 %v6283_v21  ;;  %v6343_v20 = vld [vmem:[#allocation8 + $0x32c] ss:$16 sps:$4 sm:$0xff]   ;;  %v6338_v21 = vld [vmem:[#allocation8 + $0x320] ss:$16 sps:$4 sm:$0xff]  }
 0x23a   :  { %3781 = vmatpush1.bf16.msra.mxu0 %v6278_v22  ;;  %3863 = vmatpush1.bf16.msra.mxu1 %v6281_v23  ;;  %v6341_v22 = vld [vmem:[#allocation8 + $0x328] ss:$16 sps:$4 sm:$0xff]   ;;  %v6346_v23 = vld [vmem:[#allocation8 + $0x344] ss:$16 sps:$4 sm:$0xff]  }
 0x23b   :  { %3791 = vmatprep.subr.bf16.mxu0 %v6286_v24  ;;  %3873 = vmatprep.subr.bf16.mxu1 %v6289_v25  ;;  %v6349_v24 = vld [vmem:[#allocation8 + $0x34c] ss:$16 sps:$4 sm:$0xff]   ;;  %v6344_v25 = vld [vmem:[#allocation8 + $0x340] ss:$16 sps:$4 sm:$0xff]  }
 0x2d0   :  { %v2703_v35 = vpop.f32.mrb[0].mxu0  ;;  %v6920_v36 = vpop.f32.mrb[0].mxu1 }
 0x2d1   :  { %v5534_v37 = vadd.f32 %v2703_v35, %v527_v32  ;;  %v2705_v38 = vpop.f32.mrb[1].mxu0  ;;  %v2951_v39 = vpop.f32.mrb[1].mxu1  ;;  %v6352_v32 = vld [vmem:[#allocation8 + $0x364] ss:$16 sps:$4 sm:$0xff]   ;;  %v6353_v35 = vld [vmem:[#allocation8 + $0x368] ss:$16 sps:$4 sm:$0xff]  }
 0x2d2   :  { %v5535_v40 = vadd.f32 %v2705_v38, %v531_v33  ;;  %v2707_v41 = vpop.f32.mrb[2].mxu0  ;;  %v2953_v42 = vpop.f32.mrb[2].mxu1  ;;  %v5537_v43 = vadd.f32 %v2951_v39, %v539_v34  ;;  %v6355_v33 = vld [vmem:[#allocation8 + $0x36c] ss:$16 sps:$4 sm:$0xff]   ;;  %v6350_v34 = vld [vmem:[#allocation8 + $0x360] ss:$16 sps:$4 sm:$0xff]  }
 0x2d3   :  { %v2708_v44 = vpop.f32.mrb[3].mxu0  ;;  %v2954_v45 = vpop.f32.mrb[3].mxu1  ;;  %v2956_v49 = vpack.c.bf16 %v5534_v37, %v5534_v37  ;;  %v6358_v37 = vld [vmem:[#allocation8 + $0x384] ss:$16 sps:$4 sm:$0xff]   ;;  %v6361_v38 = vld [vmem:[#allocation8 + $0x38c] ss:$16 sps:$4 sm:$0xff]  }
 0x2d4   :  { %v2957_v46 = vpack.c.bf16 %v5535_v40, %v5535_v40  ;;  %v2959_v52 = vpack.c.bf16 %v5537_v43, %v5537_v43  ;;  %v6356_v39 = vld [vmem:[#allocation8 + $0x380] ss:$16 sps:$4 sm:$0xff]   ;;  %v6359_v40 = vld [vmem:[#allocation8 + $0x388] ss:$16 sps:$4 sm:$0xff]   ;;  %v6364_v41 = vld [vmem:[#allocation8 + $0x3a4] ss:$16 sps:$4 sm:$0xff]  }
 0x2d5   :  { %v6367_v42 = vld [vmem:[#allocation8 + $0x3ac] ss:$16 sps:$4 sm:$0xff]   ;;  %v6362_v43 = vld [vmem:[#allocation8 + $0x3a0] ss:$16 sps:$4 sm:$0xff]   ;;  %v6365_v44 = vld [vmem:[#allocation8 + $0x3a8] ss:$16 sps:$4 sm:$0xff]  }
 0x2d6   :  { %3782 = vmatprep.mubr.bf16.mxu0 %v2957_v46  ;;  %3864 = vmatprep.mubr.bf16.mxu1 %v2957_v46  ;;  %v6923_v45 = vsub.s32 2, %v6901_v27  ;;  %v6370_v46 = vld [vmem:[#allocation8 + $0x3c4] ss:$16 sps:$4 sm:$0xff]   ;;  %v6377_v27 = vld [vmem:[#allocation8 + $0x3e8] ss:$16 sps:$4 sm:$0xff]  }
 0x2d7   :  { %3783 = vmatmul.mubr.bf16.vlgmr.msra.gmra.mrb[4].mxu0 %v2956_v49  ;;  %3865 = vmatmul.mubr.bf16.vlgmr.msra.gmra.mrb[4].mxu1 %v2956_v49  ;;  %v6371_v49 = vld [vmem:[#allocation8 + $0x3c8] ss:$16 sps:$4 sm:$0xff]  }
 0x2d8   :  { %3792 = vmatpush1.bf16.msra.mxu0 %v6284_v47  ;;  %3874 = vmatpush1.bf16.msra.mxu1 %v6287_v48  ;;  %v6373_v47 = vld [vmem:[#allocation8 + $0x3cc] ss:$16 sps:$4 sm:$0xff]   ;;  %v6368_v48 = vld [vmem:[#allocation8 + $0x3c0] ss:$16 sps:$4 sm:$0xff]  }
 0x2d9   :  { %3823 = vmatprep.mubr.bf16.mxu0 %v2959_v52  ;;  %3905 = vmatprep.mubr.bf16.mxu1 %v2959_v52  ;;  %v6379_v52 = vld [vmem:[#allocation8 + $0x3ec] ss:$16 sps:$4 sm:$0xff]  }
 0x2da   :  { %3793 = vmatprep.subr.bf16.mxu0 %v6292_v50  ;;  %3875 = vmatprep.subr.bf16.mxu1 %v6295_v51  ;;  %v535_v50 = vrot.slane %v6906_v29, %v6923_v45  ;;  %v6376_v51 = vld [vmem:[#allocation8 + $0x3e4] ss:$16 sps:$4 sm:$0xff]   ;;  %v6388_v29 = vld [vmem:[#allocation11 + $0x24] ss:$16 sps:$4 sm:$0xff]  }
 0x2dc   :  { %3794 = vmatpush1.bf16.msra.mxu0 %v6290_v53  ;;  %3876 = vmatpush1.bf16.msra.mxu1 %v6293_v54  ;;  %v6374_v53 = vld [vmem:[#allocation8 + $0x3e0] ss:$16 sps:$4 sm:$0xff]   ;;  %v5536_v54 = vadd.f32 %v6920_v36, %v535_v50  ;;  %v6394_v36 = vld [vmem:[#allocation11 + $0x44] ss:$16 sps:$4 sm:$0xff]  }
 0x2dd   :  { %3795 = vmatprep.subr.bf16.mxu0 %v6298_v55  ;;  %3877 = vmatprep.subr.bf16.mxu1 %v6301_v56  ;;  %v6382_v55 = vld [vmem:[#allocation11 + $0x4] ss:$16 sps:$4 sm:$0xff]   ;;  %v6385_v56 = vld [vmem:[#allocation11 + $0xc] ss:$16 sps:$4 sm:$0xff]  }
 0x2de   :  { %v6463_v50 = vld [vmem:[#allocation11 + $0x1ac] ss:$16 sps:$4 sm:$0xff]  }
 0x2e0   :  { %3796 = vmatpush1.bf16.msra.mxu0 %v6296_v57  ;;  %3878 = vmatpush1.bf16.msra.mxu1 %v6299_v58  ;;  %v6380_v57 = vld [vmem:[#allocation11] ss:$16 sps:$4 sm:$0xff]   ;;  %v6383_v58 = vld [vmem:[#allocation11 + $0x8] ss:$16 sps:$4 sm:$0xff]  }
 0x2e1   :  { %3797 = vmatprep.subr.bf16.mxu0 %v6304_v59  ;;  %3879 = vmatprep.subr.bf16.mxu1 %v6307_v60  ;;  %v2958_v59 = vpack.c.bf16 %v5536_v54, %v5536_v54  ;;  %v6391_v60 = vld [vmem:[#allocation11 + $0x2c] ss:$16 sps:$4 sm:$0xff]   ;;  %v6464_v54 = vld [vmem:[#allocation11 + $0x1c0] ss:$16 sps:$4 sm:$0xff]  }
 0x2e4   :  { %3798 = vmatpush1.bf16.msra.mxu0 %v6302_v61  ;;  %3880 = vmatpush1.bf16.msra.mxu1 %v6305_v62  ;;  %v6386_v61 = vld [vmem:[#allocation11 + $0x20] ss:$16 sps:$4 sm:$0xff]   ;;  %v6389_v62 = vld [vmem:[#allocation11 + $0x28] ss:$16 sps:$4 sm:$0xff]  }
 0x2e5   :  { %3799 = vmatprep.subr.bf16.mxu0 %v6310_v63  ;;  %3881 = vmatprep.subr.bf16.mxu1 %v6313_v0  ;;  %v6397_v63 = vld [vmem:[#allocation11 + $0x4c] ss:$16 sps:$4 sm:$0xff]   ;;  %v6392_v0 = vld [vmem:[#allocation11 + $0x40] ss:$16 sps:$4 sm:$0xff]  }
 0x2e8   :  { %3800 = vmatpush1.bf16.msra.mxu0 %v6308_v1  ;;  %3882 = vmatpush1.bf16.msra.mxu1 %v6311_v2  ;;  %v6395_v1 = vld [vmem:[#allocation11 + $0x48] ss:$16 sps:$4 sm:$0xff]   ;;  %v6400_v2 = vld [vmem:[#allocation11 + $0x64] ss:$16 sps:$4 sm:$0xff]  }
 0x2e9   :  { %3801 = vmatprep.subr.bf16.mxu0 %v6316_v3  ;;  %3883 = vmatprep.subr.bf16.mxu1 %v6319_v4  ;;  %v6403_v3 = vld [vmem:[#allocation11 + $0x6c] ss:$16 sps:$4 sm:$0xff]   ;;  %v6398_v4 = vld [vmem:[#allocation11 + $0x60] ss:$16 sps:$4 sm:$0xff]  }
 0x2ec   :  { %3802 = vmatpush1.bf16.msra.mxu0 %v6314_v5  ;;  %3884 = vmatpush1.bf16.msra.mxu1 %v6317_v6  ;;  %v6401_v5 = vld [vmem:[#allocation11 + $0x68] ss:$16 sps:$4 sm:$0xff]   ;;  %v6406_v6 = vld [vmem:[#allocation11 + $0x84] ss:$16 sps:$4 sm:$0xff]  }
 0x2ed   :  { %3803 = vmatprep.subr.bf16.mxu0 %v6322_v7  ;;  %3885 = vmatprep.subr.bf16.mxu1 %v6325_v8  ;;  %v6409_v7 = vld [vmem:[#allocation11 + $0x8c] ss:$16 sps:$4 sm:$0xff]   ;;  %v6404_v8 = vld [vmem:[#allocation11 + $0x80] ss:$16 sps:$4 sm:$0xff]  }
 0x2f0   :  { %3804 = vmatpush1.bf16.msra.mxu0 %v6320_v9  ;;  %3886 = vmatpush1.bf16.msra.mxu1 %v6323_v10  ;;  %v6407_v9 = vld [vmem:[#allocation11 + $0x88] ss:$16 sps:$4 sm:$0xff]   ;;  %v6412_v10 = vld [vmem:[#allocation11 + $0xa4] ss:$16 sps:$4 sm:$0xff]  }
 0x2f1   :  { %3805 = vmatprep.subr.bf16.mxu0 %v6328_v11  ;;  %3887 = vmatprep.subr.bf16.mxu1 %v6331_v12  ;;  %v6415_v11 = vld [vmem:[#allocation11 + $0xac] ss:$16 sps:$4 sm:$0xff]   ;;  %v6410_v12 = vld [vmem:[#allocation11 + $0xa0] ss:$16 sps:$4 sm:$0xff]  }
 0x2f4   :  { %3806 = vmatpush1.bf16.msra.mxu0 %v6326_v13  ;;  %3888 = vmatpush1.bf16.msra.mxu1 %v6329_v14  ;;  %v6413_v13 = vld [vmem:[#allocation11 + $0xa8] ss:$16 sps:$4 sm:$0xff]   ;;  %v6418_v14 = vld [vmem:[#allocation11 + $0xc4] ss:$16 sps:$4 sm:$0xff]  }
 0x2f5   :  { %3807 = vmatprep.subr.bf16.mxu0 %v6334_v15  ;;  %3889 = vmatprep.subr.bf16.mxu1 %v6337_v16  ;;  %v6421_v15 = vld [vmem:[#allocation11 + $0xcc] ss:$16 sps:$4 sm:$0xff]   ;;  %v6416_v16 = vld [vmem:[#allocation11 + $0xc0] ss:$16 sps:$4 sm:$0xff]  }
 0x2f8   :  { %3808 = vmatpush1.bf16.msra.mxu0 %v6332_v17  ;;  %3890 = vmatpush1.bf16.msra.mxu1 %v6335_v18  ;;  %v6419_v17 = vld [vmem:[#allocation11 + $0xc8] ss:$16 sps:$4 sm:$0xff]   ;;  %v6424_v18 = vld [vmem:[#allocation11 + $0xe4] ss:$16 sps:$4 sm:$0xff]  }
 0x2f9   :  { %3809 = vmatprep.subr.bf16.mxu0 %v6340_v19  ;;  %3891 = vmatprep.subr.bf16.mxu1 %v6343_v20  ;;  %v6427_v19 = vld [vmem:[#allocation11 + $0xec] ss:$16 sps:$4 sm:$0xff]   ;;  %v6422_v20 = vld [vmem:[#allocation11 + $0xe0] ss:$16 sps:$4 sm:$0xff]  }
 0x2fc   :  { %3810 = vmatpush1.bf16.msra.mxu0 %v6338_v21  ;;  %3892 = vmatpush1.bf16.msra.mxu1 %v6341_v22  ;;  %v6425_v21 = vld [vmem:[#allocation11 + $0xe8] ss:$16 sps:$4 sm:$0xff]   ;;  %v6430_v22 = vld [vmem:[#allocation11 + $0x104] ss:$16 sps:$4 sm:$0xff]  }
 0x2fd   :  { %3811 = vmatprep.subr.bf16.mxu0 %v6346_v23  ;;  %3893 = vmatprep.subr.bf16.mxu1 %v6349_v24  ;;  %v6433_v23 = vld [vmem:[#allocation11 + $0x10c] ss:$16 sps:$4 sm:$0xff]   ;;  %v6428_v24 = vld [vmem:[#allocation11 + $0x100] ss:$16 sps:$4 sm:$0xff]  }
 0x300   :  { %3812 = vmatpush1.bf16.msra.mxu0 %v6344_v25  ;;  %3894 = vmatpush1.bf16.msra.mxu1 %v6347_v26  ;;  %v6431_v25 = vld [vmem:[#allocation11 + $0x108] ss:$16 sps:$4 sm:$0xff]   ;;  %v6436_v26 = vld [vmem:[#allocation11 + $0x124] ss:$16 sps:$4 sm:$0xff]  }
 0x301   :  { %3813 = vmatprep.subr.bf16.mxu0 %v6352_v32  ;;  %3895 = vmatprep.subr.bf16.mxu1 %v6355_v33  ;;  %v6439_v32 = vld [vmem:[#allocation11 + $0x12c] ss:$16 sps:$4 sm:$0xff]   ;;  %v6434_v33 = vld [vmem:[#allocation11 + $0x120] ss:$16 sps:$4 sm:$0xff]  }
 0x304   :  { %3814 = vmatpush1.bf16.msra.mxu0 %v6350_v34  ;;  %3896 = vmatpush1.bf16.msra.mxu1 %v6353_v35  ;;  %v6437_v34 = vld [vmem:[#allocation11 + $0x128] ss:$16 sps:$4 sm:$0xff]   ;;  %v6442_v35 = vld [vmem:[#allocation11 + $0x144] ss:$16 sps:$4 sm:$0xff]  }
 0x305   :  { %3815 = vmatprep.subr.bf16.mxu0 %v6358_v37  ;;  %3897 = vmatprep.subr.bf16.mxu1 %v6361_v38  ;;  %v6445_v37 = vld [vmem:[#allocation11 + $0x14c] ss:$16 sps:$4 sm:$0xff]   ;;  %v6440_v38 = vld [vmem:[#allocation11 + $0x140] ss:$16 sps:$4 sm:$0xff]  }
 0x308   :  { %3816 = vmatpush1.bf16.msra.mxu0 %v6356_v39  ;;  %3898 = vmatpush1.bf16.msra.mxu1 %v6359_v40  ;;  %v6443_v39 = vld [vmem:[#allocation11 + $0x148] ss:$16 sps:$4 sm:$0xff]   ;;  %v6448_v40 = vld [vmem:[#allocation11 + $0x164] ss:$16 sps:$4 sm:$0xff]  }
 0x309   :  { %3817 = vmatprep.subr.bf16.mxu0 %v6364_v41  ;;  %3899 = vmatprep.subr.bf16.mxu1 %v6367_v42  ;;  %v6451_v41 = vld [vmem:[#allocation11 + $0x16c] ss:$16 sps:$4 sm:$0xff]   ;;  %v6446_v42 = vld [vmem:[#allocation11 + $0x160] ss:$16 sps:$4 sm:$0xff]  }
 0x30c   :  { %3818 = vmatpush1.bf16.msra.mxu0 %v6362_v43  ;;  %3900 = vmatpush1.bf16.msra.mxu1 %v6365_v44  ;;  %v6449_v43 = vld [vmem:[#allocation11 + $0x168] ss:$16 sps:$4 sm:$0xff]   ;;  %v6454_v44 = vld [vmem:[#allocation11 + $0x184] ss:$16 sps:$4 sm:$0xff]  }
 0x30d   :  { %3819 = vmatprep.subr.bf16.mxu0 %v6370_v46  ;;  %3901 = vmatprep.subr.bf16.mxu1 %v6373_v47  ;;  %v6457_v46 = vld [vmem:[#allocation11 + $0x18c] ss:$16 sps:$4 sm:$0xff]   ;;  %v6452_v47 = vld [vmem:[#allocation11 + $0x180] ss:$16 sps:$4 sm:$0xff]  }
 0x310   :  { %3820 = vmatpush1.bf16.msra.mxu0 %v6368_v48  ;;  %3902 = vmatpush1.bf16.msra.mxu1 %v6371_v49  ;;  %v6455_v48 = vld [vmem:[#allocation11 + $0x188] ss:$16 sps:$4 sm:$0xff]   ;;  %v6460_v49 = vld [vmem:[#allocation11 + $0x1a4] ss:$16 sps:$4 sm:$0xff]  }
 0x311   :  { %3821 = vmatprep.subr.bf16.mxu0 %v6376_v51  ;;  %3903 = vmatprep.subr.bf16.mxu1 %v6379_v52  ;;  %v6458_v51 = vld [vmem:[#allocation11 + $0x1a0] ss:$16 sps:$4 sm:$0xff]   ;;  %v6461_v52 = vld [vmem:[#allocation11 + $0x1a8] ss:$16 sps:$4 sm:$0xff]  }
 0x314   :  { %3822 = vmatpush1.bf16.msra.mxu0 %v6374_v53  ;;  %3904 = vmatpush1.bf16.msra.mxu1 %v6377_v27  ;;  %v6466_v53 = vld [vmem:[#allocation11 + $0x1c4] ss:$16 sps:$4 sm:$0xff]   ;;  %v6469_v27 = vld [vmem:[#allocation11 + $0x1cc] ss:$16 sps:$4 sm:$0xff]  }
 0x315   :  { %4708 = vmatprep.subr.bf16.mxu0 %v6382_v55  ;;  %4790 = vmatprep.subr.bf16.mxu1 %v6385_v56  ;;  %v6467_v55 = vld [vmem:[#allocation11 + $0x1c8] ss:$16 sps:$4 sm:$0xff]   ;;  %v6472_v56 = vld [vmem:[#allocation11 + $0x1e4] ss:$16 sps:$4 sm:$0xff]  }
 0x317   :  { %3824 = vmatmul.mubr.bf16.vlgmr.msra.gmra.mrb[4].mxu0 %v2958_v59  ;;  %3906 = vmatmul.mubr.bf16.vlgmr.msra.gmra.mrb[4].mxu1 %v2958_v59  ;;  %v6473_v59 = vld [vmem:[#allocation11 + $0x1e8] ss:$16 sps:$4 sm:$0xff]  }
 0x318   :  { %4709 = vmatpush1.bf16.msra.mxu0 %v6380_v57  ;;  %4791 = vmatpush1.bf16.msra.mxu1 %v6383_v58  ;;  %v6475_v57 = vld [vmem:[#allocation11 + $0x1ec] ss:$16 sps:$4 sm:$0xff]   ;;  %v6470_v58 = vld [vmem:[#allocation11 + $0x1e0] ss:$16 sps:$4 sm:$0xff]  }
 0x319   :  { %4710 = vmatprep.subr.bf16.mxu0 %v6388_v29  ;;  %4792 = vmatprep.subr.bf16.mxu1 %v6391_v60  ;;  %v6478_v29 = vld [vmem:[#allocation11 + $0x204] ss:$16 sps:$4 sm:$0xff]   ;;  %v6481_v60 = vld [vmem:[#allocation11 + $0x20c] ss:$16 sps:$4 sm:$0xff]  }
 0x31c   :  { %4711 = vmatpush1.bf16.msra.mxu0 %v6386_v61  ;;  %4793 = vmatpush1.bf16.msra.mxu1 %v6389_v62  ;;  %v6928_v61 = vld [vmem:[#allocation10] sm:$0xf] }
 0x31d   :  { %4712 = vmatprep.subr.bf16.mxu0 %v6394_v36  ;;  %4794 = vmatprep.subr.bf16.mxu1 %v6397_v63  ;;  %v3093_v62 = vrot.slane %v6928_v61, %v6904_v28  ;;  %v3097_v36 = vrot.slane %v6928_v61, %v6909_v30  ;;  %v3105_v63 = vrot.slane %v6928_v61, %v6912_v31 }
 0x320   :  { %4713 = vmatpush1.bf16.msra.mxu0 %v6392_v0  ;;  %4795 = vmatpush1.bf16.msra.mxu1 %v6395_v1 }
 0x321   :  { %4714 = vmatprep.subr.bf16.mxu0 %v6400_v2  ;;  %4796 = vmatprep.subr.bf16.mxu1 %v6403_v3 }
 0x324   :  { %4715 = vmatpush1.bf16.msra.mxu0 %v6398_v4  ;;  %4797 = vmatpush1.bf16.msra.mxu1 %v6401_v5 }
 0x325   :  { %4716 = vmatprep.subr.bf16.mxu0 %v6406_v6  ;;  %4798 = vmatprep.subr.bf16.mxu1 %v6409_v7 }
 0x328   :  { %4717 = vmatpush1.bf16.msra.mxu0 %v6404_v8  ;;  %4799 = vmatpush1.bf16.msra.mxu1 %v6407_v9 }
 0x329   :  { %4718 = vmatprep.subr.bf16.mxu0 %v6412_v10  ;;  %4800 = vmatprep.subr.bf16.mxu1 %v6415_v11 }
 0x32c   :  { %4719 = vmatpush1.bf16.msra.mxu0 %v6410_v12  ;;  %4801 = vmatpush1.bf16.msra.mxu1 %v6413_v13  ;;  %v6476_v12 = vld [vmem:[#allocation11 + $0x200] ss:$16 sps:$4 sm:$0xff]   ;;  %v6479_v13 = vld [vmem:[#allocation11 + $0x208] ss:$16 sps:$4 sm:$0xff]  }
 0x32d   :  { %4720 = vmatprep.subr.bf16.mxu0 %v6418_v14  ;;  %4802 = vmatprep.subr.bf16.mxu1 %v6421_v15  ;;  %v6484_v15 = vld [vmem:[#allocation11 + $0x224] ss:$16 sps:$4 sm:$0xff]  }
 0x330   :  { %4721 = vmatpush1.bf16.msra.mxu0 %v6416_v16  ;;  %4803 = vmatpush1.bf16.msra.mxu1 %v6419_v17  ;;  %v6487_v16 = vld [vmem:[#allocation11 + $0x22c] ss:$16 sps:$4 sm:$0xff]  }
 0x331   :  { %4722 = vmatprep.subr.bf16.mxu0 %v6424_v18  ;;  %4804 = vmatprep.subr.bf16.mxu1 %v6427_v19  ;;  %v6482_v18 = vld [vmem:[#allocation11 + $0x220] ss:$16 sps:$4 sm:$0xff]   ;;  %v6485_v19 = vld [vmem:[#allocation11 + $0x228] ss:$16 sps:$4 sm:$0xff]  }
 0x334   :  { %4723 = vmatpush1.bf16.msra.mxu0 %v6422_v20  ;;  %4805 = vmatpush1.bf16.msra.mxu1 %v6425_v21  ;;  %v6490_v20 = vld [vmem:[#allocation11 + $0x244] ss:$16 sps:$4 sm:$0xff]   ;;  %v6493_v21 = vld [vmem:[#allocation11 + $0x24c] ss:$16 sps:$4 sm:$0xff]  }
 0x335   :  { %4724 = vmatprep.subr.bf16.mxu0 %v6430_v22  ;;  %4806 = vmatprep.subr.bf16.mxu1 %v6433_v23  ;;  %v6488_v22 = vld [vmem:[#allocation11 + $0x240] ss:$16 sps:$4 sm:$0xff]   ;;  %v6491_v23 = vld [vmem:[#allocation11 + $0x248] ss:$16 sps:$4 sm:$0xff]  }
 0x338   :  { %4725 = vmatpush1.bf16.msra.mxu0 %v6428_v24  ;;  %4807 = vmatpush1.bf16.msra.mxu1 %v6431_v25  ;;  %v6496_v24 = vld [vmem:[#allocation11 + $0x264] ss:$16 sps:$4 sm:$0xff]   ;;  %v6499_v25 = vld [vmem:[#allocation11 + $0x26c] ss:$16 sps:$4 sm:$0xff]  }
 0x339   :  { %4726 = vmatprep.subr.bf16.mxu0 %v6436_v26  ;;  %4808 = vmatprep.subr.bf16.mxu1 %v6439_v32  ;;  %v6494_v26 = vld [vmem:[#allocation11 + $0x260] ss:$16 sps:$4 sm:$0xff]   ;;  %v6497_v32 = vld [vmem:[#allocation11 + $0x268] ss:$16 sps:$4 sm:$0xff]  }
 0x33c   :  { %4727 = vmatpush1.bf16.msra.mxu0 %v6434_v33  ;;  %4809 = vmatpush1.bf16.msra.mxu1 %v6437_v34  ;;  %v6502_v33 = vld [vmem:[#allocation11 + $0x284] ss:$16 sps:$4 sm:$0xff]   ;;  %v6505_v34 = vld [vmem:[#allocation11 + $0x28c] ss:$16 sps:$4 sm:$0xff]  }
 0x33d   :  { %4728 = vmatprep.subr.bf16.mxu0 %v6442_v35  ;;  %4810 = vmatprep.subr.bf16.mxu1 %v6445_v37  ;;  %v6500_v35 = vld [vmem:[#allocation11 + $0x280] ss:$16 sps:$4 sm:$0xff]   ;;  %v6503_v37 = vld [vmem:[#allocation11 + $0x288] ss:$16 sps:$4 sm:$0xff]  }
 0x340   :  { %4729 = vmatpush1.bf16.msra.mxu0 %v6440_v38  ;;  %4811 = vmatpush1.bf16.msra.mxu1 %v6443_v39  ;;  %v6508_v38 = vld [vmem:[#allocation11 + $0x2a4] ss:$16 sps:$4 sm:$0xff]   ;;  %v6511_v39 = vld [vmem:[#allocation11 + $0x2ac] ss:$16 sps:$4 sm:$0xff]  }
 0x341   :  { %4730 = vmatprep.subr.bf16.mxu0 %v6448_v40  ;;  %4812 = vmatprep.subr.bf16.mxu1 %v6451_v41  ;;  %v6506_v40 = vld [vmem:[#allocation11 + $0x2a0] ss:$16 sps:$4 sm:$0xff]   ;;  %v6509_v41 = vld [vmem:[#allocation11 + $0x2a8] ss:$16 sps:$4 sm:$0xff]  }
 0x344   :  { %4731 = vmatpush1.bf16.msra.mxu0 %v6446_v42  ;;  %4813 = vmatpush1.bf16.msra.mxu1 %v6449_v43  ;;  %v6514_v42 = vld [vmem:[#allocation11 + $0x2c4] ss:$16 sps:$4 sm:$0xff]   ;;  %v6517_v43 = vld [vmem:[#allocation11 + $0x2cc] ss:$16 sps:$4 sm:$0xff]  }
 0x345   :  { %4732 = vmatprep.subr.bf16.mxu0 %v6454_v44  ;;  %4814 = vmatprep.subr.bf16.mxu1 %v6457_v46  ;;  %v6512_v44 = vld [vmem:[#allocation11 + $0x2c0] ss:$16 sps:$4 sm:$0xff]   ;;  %v6515_v46 = vld [vmem:[#allocation11 + $0x2c8] ss:$16 sps:$4 sm:$0xff]  }
 0x348   :  { %4733 = vmatpush1.bf16.msra.mxu0 %v6452_v47  ;;  %4815 = vmatpush1.bf16.msra.mxu1 %v6455_v48  ;;  %v6520_v47 = vld [vmem:[#allocation11 + $0x2e4] ss:$16 sps:$4 sm:$0xff]   ;;  %v6523_v48 = vld [vmem:[#allocation11 + $0x2ec] ss:$16 sps:$4 sm:$0xff]  }
 0x349   :  { %4734 = vmatprep.subr.bf16.mxu0 %v6460_v49  ;;  %4816 = vmatprep.subr.bf16.mxu1 %v6463_v50  ;;  %v6518_v49 = vld [vmem:[#allocation11 + $0x2e0] ss:$16 sps:$4 sm:$0xff]   ;;  %v6521_v50 = vld [vmem:[#allocation11 + $0x2e8] ss:$16 sps:$4 sm:$0xff]  }
 0x34c   :  { %4735 = vmatpush1.bf16.msra.mxu0 %v6458_v51  ;;  %4817 = vmatpush1.bf16.msra.mxu1 %v6461_v52  ;;  %v6526_v51 = vld [vmem:[#allocation11 + $0x304] ss:$16 sps:$4 sm:$0xff]   ;;  %v6529_v52 = vld [vmem:[#allocation11 + $0x30c] ss:$16 sps:$4 sm:$0xff]  }
 0x34d   :  { %4736 = vmatprep.subr.bf16.mxu0 %v6466_v53  ;;  %4818 = vmatprep.subr.bf16.mxu1 %v6469_v27  ;;  %v6524_v53 = vld [vmem:[#allocation11 + $0x300] ss:$16 sps:$4 sm:$0xff]   ;;  %v6527_v27 = vld [vmem:[#allocation11 + $0x308] ss:$16 sps:$4 sm:$0xff]  }
 0x350   :  { %4737 = vmatpush1.bf16.msra.mxu0 %v6464_v54  ;;  %4819 = vmatpush1.bf16.msra.mxu1 %v6467_v55  ;;  %v6532_v54 = vld [vmem:[#allocation11 + $0x324] ss:$16 sps:$4 sm:$0xff]   ;;  %v6535_v55 = vld [vmem:[#allocation11 + $0x32c] ss:$16 sps:$4 sm:$0xff]  }
 0x351   :  { %4738 = vmatprep.subr.bf16.mxu0 %v6472_v56  ;;  %4820 = vmatprep.subr.bf16.mxu1 %v6475_v57  ;;  %v6530_v56 = vld [vmem:[#allocation11 + $0x320] ss:$16 sps:$4 sm:$0xff]   ;;  %v6533_v57 = vld [vmem:[#allocation11 + $0x328] ss:$16 sps:$4 sm:$0xff]  }
 0x354   :  { %4739 = vmatpush1.bf16.msra.mxu0 %v6470_v58  ;;  %4821 = vmatpush1.bf16.msra.mxu1 %v6473_v59  ;;  %v6538_v58 = vld [vmem:[#allocation11 + $0x344] ss:$16 sps:$4 sm:$0xff]   ;;  %v6541_v59 = vld [vmem:[#allocation11 + $0x34c] ss:$16 sps:$4 sm:$0xff]  }
 0x355   :  { %4749 = vmatprep.subr.bf16.mxu0 %v6478_v29  ;;  %4831 = vmatprep.subr.bf16.mxu1 %v6481_v60  ;;  %v6536_v29 = vld [vmem:[#allocation11 + $0x340] ss:$16 sps:$4 sm:$0xff]   ;;  %v6539_v60 = vld [vmem:[#allocation11 + $0x348] ss:$16 sps:$4 sm:$0xff]  }
 0x3ea   :  { %v3825_v0 = vpop.f32.mrb[4].mxu0  ;;  %v6936_v1 = vpop.f32.mrb[4].mxu1 }
 0x3eb   :  { %v5538_v2 = vadd.f32 %v3825_v0, %v3093_v62  ;;  %v3827_v3 = vpop.f32.mrb[5].mxu0  ;;  %v3909_v4 = vpop.f32.mrb[5].mxu1  ;;  %v6544_v62 = vld [vmem:[#allocation11 + $0x364] ss:$16 sps:$4 sm:$0xff]   ;;  %v6545_v0 = vld [vmem:[#allocation11 + $0x368] ss:$16 sps:$4 sm:$0xff]  }
 0x3ec   :  { %v5539_v5 = vadd.f32 %v3827_v3, %v3097_v36  ;;  %v3829_v6 = vpop.f32.mrb[6].mxu0  ;;  %v3911_v7 = vpop.f32.mrb[6].mxu1  ;;  %v5541_v8 = vadd.f32 %v3909_v4, %v3105_v63  ;;  %v6547_v36 = vld [vmem:[#allocation11 + $0x36c] ss:$16 sps:$4 sm:$0xff]   ;;  %v6542_v63 = vld [vmem:[#allocation11 + $0x360] ss:$16 sps:$4 sm:$0xff]  }
 0x3ed   :  { %v3830_v9 = vpop.f32.mrb[7].mxu0  ;;  %v3912_v10 = vpop.f32.mrb[7].mxu1  ;;  %v3914_v14 = vpack.c.bf16 %v5538_v2, %v5538_v2  ;;  %v6550_v2 = vld [vmem:[#allocation11 + $0x384] ss:$16 sps:$4 sm:$0xff]   ;;  %v6553_v3 = vld [vmem:[#allocation11 + $0x38c] ss:$16 sps:$4 sm:$0xff]  }
 0x3ee   :  { %v3915_v11 = vpack.c.bf16 %v5539_v5, %v5539_v5  ;;  %v3917_v17 = vpack.c.bf16 %v5541_v8, %v5541_v8  ;;  %v6548_v4 = vld [vmem:[#allocation11 + $0x380] ss:$16 sps:$4 sm:$0xff]   ;;  %v6551_v5 = vld [vmem:[#allocation11 + $0x388] ss:$16 sps:$4 sm:$0xff]   ;;  %v6556_v6 = vld [vmem:[#allocation11 + $0x3a4] ss:$16 sps:$4 sm:$0xff]  }
 0x3ef   :  { %v6559_v7 = vld [vmem:[#allocation11 + $0x3ac] ss:$16 sps:$4 sm:$0xff]   ;;  %v6554_v8 = vld [vmem:[#allocation11 + $0x3a0] ss:$16 sps:$4 sm:$0xff]   ;;  %v6557_v9 = vld [vmem:[#allocation11 + $0x3a8] ss:$16 sps:$4 sm:$0xff]  }
 0x3f0   :  { %4740 = vmatprep.mubr.bf16.mxu0 %v3915_v11  ;;  %4822 = vmatprep.mubr.bf16.mxu1 %v3915_v11  ;;  %v6562_v10 = vld [vmem:[#allocation11 + $0x3c4] ss:$16 sps:$4 sm:$0xff]   ;;  %v6565_v11 = vld [vmem:[#allocation11 + $0x3cc] ss:$16 sps:$4 sm:$0xff]  }
 0x3f1   :  { %4741 = vmatmul.mubr.bf16.vlgmr.msra.gmra.mrb[8].mxu0 %v3914_v14  ;;  %4823 = vmatmul.mubr.bf16.vlgmr.msra.gmra.mrb[8].mxu1 %v3914_v14  ;;  %v3101_v14 = vrot.slane %v6928_v61, %v6923_v45 }
 0x3f2   :  { %4750 = vmatpush1.bf16.msra.mxu0 %v6476_v12  ;;  %4832 = vmatpush1.bf16.msra.mxu1 %v6479_v13  ;;  %v6560_v12 = vld [vmem:[#allocation11 + $0x3c0] ss:$16 sps:$4 sm:$0xff]   ;;  %v6563_v13 = vld [vmem:[#allocation11 + $0x3c8] ss:$16 sps:$4 sm:$0xff]  }
 0x3f3   :  { %4781 = vmatprep.mubr.bf16.mxu0 %v3917_v17  ;;  %4863 = vmatprep.mubr.bf16.mxu1 %v3917_v17  ;;  %v6566_v17 = vld [vmem:[#allocation11 + $0x3e0] ss:$16 sps:$4 sm:$0xff]  }
 0x3f4   :  { %4751 = vmatprep.subr.bf16.mxu0 %v6484_v15  ;;  %4833 = vmatprep.subr.bf16.mxu1 %v6487_v16  ;;  %v6568_v15 = vld [vmem:[#allocation11 + $0x3e4] ss:$16 sps:$4 sm:$0xff]   ;;  %v6571_v16 = vld [vmem:[#allocation11 + $0x3ec] ss:$16 sps:$4 sm:$0xff]  }
 0x3f6   :  { %4752 = vmatpush1.bf16.msra.mxu0 %v6482_v18  ;;  %4834 = vmatpush1.bf16.msra.mxu1 %v6485_v19  ;;  %v6569_v18 = vld [vmem:[#allocation11 + $0x3e8] ss:$16 sps:$4 sm:$0xff]   ;;  %v5540_v19 = vadd.f32 %v6936_v1, %v3101_v14 }
 0x3f7   :  { %4753 = vmatprep.subr.bf16.mxu0 %v6490_v20  ;;  %4835 = vmatprep.subr.bf16.mxu1 %v6493_v21  ;;  %v4046_v21 = vld [vmem:[#allocation13] sm:$0xf] }
 0x3f8   :  { %v3916_v20 = vpack.c.bf16 %v5540_v19, %v5540_v19  ;;  %v4051_v61 = vrot.slane %v4046_v21, %v6904_v28 }
 0x3fa   :  { %4754 = vmatpush1.bf16.msra.mxu0 %v6488_v22  ;;  %4836 = vmatpush1.bf16.msra.mxu1 %v6491_v23  ;;  %v4059_v22 = vrot.slane %v4046_v21, %v6923_v45  ;;  %v4055_v23 = vrot.slane %v4046_v21, %v6909_v30 }
 0x3fb   :  { %4755 = vmatprep.subr.bf16.mxu0 %v6496_v24  ;;  %4837 = vmatprep.subr.bf16.mxu1 %v6499_v25  ;;  %v4063_v24 = vrot.slane %v4046_v21, %v6912_v31 }
 0x3fe   :  { %4756 = vmatpush1.bf16.msra.mxu0 %v6494_v26  ;;  %4838 = vmatpush1.bf16.msra.mxu1 %v6497_v32 }
 0x3ff   :  { %4757 = vmatprep.subr.bf16.mxu0 %v6502_v33  ;;  %4839 = vmatprep.subr.bf16.mxu1 %v6505_v34 }
 0x402   :  { %4758 = vmatpush1.bf16.msra.mxu0 %v6500_v35  ;;  %4840 = vmatpush1.bf16.msra.mxu1 %v6503_v37 }
 0x403   :  { %4759 = vmatprep.subr.bf16.mxu0 %v6508_v38  ;;  %4841 = vmatprep.subr.bf16.mxu1 %v6511_v39 }
 0x406   :  { %4760 = vmatpush1.bf16.msra.mxu0 %v6506_v40  ;;  %4842 = vmatpush1.bf16.msra.mxu1 %v6509_v41 }
 0x407   :  { %4761 = vmatprep.subr.bf16.mxu0 %v6514_v42  ;;  %4843 = vmatprep.subr.bf16.mxu1 %v6517_v43 }
 0x40a   :  { %4762 = vmatpush1.bf16.msra.mxu0 %v6512_v44  ;;  %4844 = vmatpush1.bf16.msra.mxu1 %v6515_v46 }
 0x40b   :  { %4763 = vmatprep.subr.bf16.mxu0 %v6520_v47  ;;  %4845 = vmatprep.subr.bf16.mxu1 %v6523_v48 }
 0x40e   :  { %4764 = vmatpush1.bf16.msra.mxu0 %v6518_v49  ;;  %4846 = vmatpush1.bf16.msra.mxu1 %v6521_v50 }
 0x40f   :  { %4765 = vmatprep.subr.bf16.mxu0 %v6526_v51  ;;  %4847 = vmatprep.subr.bf16.mxu1 %v6529_v52 }
 0x412   :  { %4766 = vmatpush1.bf16.msra.mxu0 %v6524_v53  ;;  %4848 = vmatpush1.bf16.msra.mxu1 %v6527_v27 }
 0x413   :  { %4767 = vmatprep.subr.bf16.mxu0 %v6532_v54  ;;  %4849 = vmatprep.subr.bf16.mxu1 %v6535_v55 }
 0x416   :  { %4768 = vmatpush1.bf16.msra.mxu0 %v6530_v56  ;;  %4850 = vmatpush1.bf16.msra.mxu1 %v6533_v57 }
 0x417   :  { %4769 = vmatprep.subr.bf16.mxu0 %v6538_v58  ;;  %4851 = vmatprep.subr.bf16.mxu1 %v6541_v59 }
 0x41a   :  { %4770 = vmatpush1.bf16.msra.mxu0 %v6536_v29  ;;  %4852 = vmatpush1.bf16.msra.mxu1 %v6539_v60 }
 0x41b   :  { %4771 = vmatprep.subr.bf16.mxu0 %v6544_v62  ;;  %4853 = vmatprep.subr.bf16.mxu1 %v6547_v36 }
 0x41e   :  { %4772 = vmatpush1.bf16.msra.mxu0 %v6542_v63  ;;  %4854 = vmatpush1.bf16.msra.mxu1 %v6545_v0 }
 0x41f   :  { %4773 = vmatprep.subr.bf16.mxu0 %v6550_v2  ;;  %4855 = vmatprep.subr.bf16.mxu1 %v6553_v3 }
 0x422   :  { %4774 = vmatpush1.bf16.msra.mxu0 %v6548_v4  ;;  %4856 = vmatpush1.bf16.msra.mxu1 %v6551_v5 }
 0x423   :  { %4775 = vmatprep.subr.bf16.mxu0 %v6556_v6  ;;  %4857 = vmatprep.subr.bf16.mxu1 %v6559_v7 }
 0x426   :  { %4776 = vmatpush1.bf16.msra.mxu0 %v6554_v8  ;;  %4858 = vmatpush1.bf16.msra.mxu1 %v6557_v9 }
 0x427   :  { %4777 = vmatprep.subr.bf16.mxu0 %v6562_v10  ;;  %4859 = vmatprep.subr.bf16.mxu1 %v6565_v11 }
 0x42a   :  { %4778 = vmatpush1.bf16.msra.mxu0 %v6560_v12  ;;  %4860 = vmatpush1.bf16.msra.mxu1 %v6563_v13 }
 0x42b   :  { %4779 = vmatprep.subr.bf16.mxu0 %v6568_v15  ;;  %4861 = vmatprep.subr.bf16.mxu1 %v6571_v16 }
 0x42e   :  { %4780 = vmatpush1.bf16.msra.mxu0 %v6566_v17  ;;  %4862 = vmatpush1.bf16.msra.mxu1 %v6569_v18 }
 0x431   :  { %4782 = vmatmul.mubr.bf16.vlgmr.msra.gmra.mrb[8].mxu0 %v3916_v20  ;;  %4864 = vmatmul.mubr.bf16.vlgmr.msra.gmra.mrb[8].mxu1 %v3916_v20 }
 0x504   :  { %v4783_v25 = vpop.f32.mrb[8].mxu0  ;;  %v4865_v1 = vpop.f32.mrb[8].mxu1 }
 0x505   :  { %v5542_v26 = vadd.f32 %v4783_v25, %v4051_v61  ;;  %v5544_v32 = vadd.f32 %v4865_v1, %v4059_v22  ;;  %v4785_v33 = vpop.f32.mrb[9].mxu0  ;;  %v4867_v34 = vpop.f32.mrb[9].mxu1 }
 0x506   :  { %v5543_v35 = vadd.f32 %v4785_v33, %v4055_v23  ;;  %v5545_v37 = vadd.f32 %v4867_v34, %v4063_v24  ;;  %v4787_v38 = vpop.f32.mrb[10].mxu0  ;;  %v4869_v39 = vpop.f32.mrb[10].mxu1 }
 0x507   :  { %4872 = vst [vmem:[#allocation14] sm:$0xff] %v5542_v26  ;;  %4874 = vst [vmem:[#allocation14 + $0x10] sm:$0xff] %v5544_v32  ;;  %v4788_v28 = vpop.f32.mrb[11].mxu0  ;;  %v4870_v45 = vpop.f32.mrb[11].mxu1 }
 0x508   :  { %4873 = vst [vmem:[#allocation14 + $0x8] sm:$0xff] %v5543_v35  ;;  %4875 = vst [vmem:[#allocation14 + $0x18] sm:$0xff] %v5545_v37 }
 0x509   :  { %6737 = shalt.err (!%p6734_p4)
}
 0x50a   :  { %s6738_s13 = scalar_lea.hbm %s6964_s7, 512 }
 0x50b   :  { %p6739_p5 = scmp.ne.s32.totalorder %s6964_s7, %s6738_s13  ;;  %p6742_p6 = scmp.lt.u32.totalorder %s6738_s13, %s6964_s7 }
 0x50d   :  { %p6744_p7 = pnand %p6742_p6, %p6739_p5 }
 0x50f   :  { %6747 = shalt.err (!%p6744_p7)
}
 0x510   :  { %4885 = dma.vmem_to_hbm [thread:$0]  %s4883_s8, 512, %s6964_s7, [#allocation4]  }
 0x511   :  { %6756 = dma.done.wait [#allocation4], 512  }
 0x512   :  { %6757 = vsyncadd [#allocation4], 4294966784 }
 0x513   :  { %4889 = vsyncpa [#allocation3], 1 }
 0x514   :  { %4890 = vsyncpa [#allocation6], 1 }
 0x515   :  { %4891 = vsyncpa [#allocation9], 1 }
 0x516   :  { %4892 = vsyncpa [#allocation12], 1 }
 0x517   :  { %4893 = vsyncpa [#allocation4], 1 }

</bundles_post_ra>
